<compile_context>
chip_gen: v7x
topology: tpu7x:2x2x1
jax: 0.10.0
libtpu: 0.0.40
codegen_flags: <defaults>
</compile_context>

<pallas_src>
import functools

import jax
import jax.numpy as jnp
from jax.experimental import pallas as pl
from jax.experimental.pallas import tpu as pltpu

_LANE = 128


def _default_act_dtype():
    """bf16 for the fc1/sigmoid chain on chips with bf16 VPU/EUP (v6e/v7x), f32 otherwise."""
    try:
        kind = jax.devices()[0].device_kind.lower()
    except Exception:
        return jnp.float32
    for old in ("v2", "v3", "v4", "v5"):
        if old in kind:
            return jnp.float32
    return jnp.bfloat16


def ournet_kernel(x_ref, w1_ref, b1_ref, w2_ref, b2_ref, o_ref, *, n_hid, cr, n_chunks):
    # x_ref : (TR, 128) f32      batch tile, sublane- and lane-dense
    # w1_ref, b1_ref, w2_ref : (H, cr, 128) act_dtype, pre-halved + pre-broadcast
    # b2_ref : (1, 1) f32 in SMEM, holds b2 + 0.5*sum(w2)
    # o_ref : (TR, 128) f32
    act_dtype = w1_ref.dtype
    bias = b2_ref[0, 0]

    @pl.loop(0, n_chunks)
    def _(c):
        r0 = pl.multiple_of(c * cr, cr)
        xc = x_ref[pl.ds(r0, cr), :]              # (cr, 128) f32, dense unmasked load
        xa = xc.astype(act_dtype)                 # bf16 on v6e/v7x, f32 on v5e

        # fc1 -> sigmoid -> fc4 with sigmoid(z) = 0.5*tanh(0.5*z) + 0.5 folded
        # into the weights: out = sum_k 0.5*w2[k]*tanh(0.5*(w1[k]*x + b1[k])) + bias.
        # One EUP transcendental per element; f32 accumulation over the hidden
        # axis, split over 4 accumulators to shorten the dependence chain.
        n_acc = min(4, n_hid)
        accs = [jnp.zeros((cr, _LANE), jnp.float32) for _ in range(n_acc)]
        for k in range(n_hid):
            z = w1_ref[k] * xa + b1_ref[k]        # (cr, 128) act_dtype (VPU)
            hk = jnp.tanh(z)                      # single EUP push per vreg
            accs[k % n_acc] = accs[k % n_acc] + (hk * w2_ref[k]).astype(jnp.float32)
        acc = accs[0]
        for extra in accs[1:]:
            acc = acc + extra

        o_ref[pl.ds(r0, cr), :] = (acc + bias).astype(o_ref.dtype)  # dense unmasked store


def ournet_forward(x, w1, b1, w2, b2, *, tb=32768, act_dtype=None):
    """x: (B, 1) f32; w1/b1/w2: (H, 1); b2: (1, 1). Returns (B, 1) f32.

    `tb`: target batch-tile size in elements (rounded to the layout granularity).
    `act_dtype`: dtype of the fc1/sigmoid chain; None = auto (bf16 on v6e/v7x).
    """
    B = x.shape[0]
    H = w1.shape[0]
    if act_dtype is None:
        act_dtype = _default_act_dtype()
    act_dtype = jnp.dtype(act_dtype)
    # Chunk rows: 16 sublanes for bf16 (fully packed vregs), 8 for f32.
    cr = 16 if act_dtype == jnp.dtype(jnp.bfloat16) else 8

    # Rows of 128 batch elements, rounded up to the in-kernel chunk granularity.
    r_need = pl.cdiv(B, _LANE)
    r_need = pl.cdiv(r_need, cr) * cr

    # VMEM cap on rows-per-tile. Budget = half of the conservative 32 MiB scoped
    # default (valid on v5e/v6e and on v7x's 64 MiB physical VMEM).
    wbytes = 3 * act_dtype.itemsize * H * cr * _LANE        # replicated w1/b1/w2
    chunk_bytes = 2 * H * cr * _LANE * 4                    # live per-chunk working set
    budget = (32 * 1024 * 1024) // 2
    per_row = 2 * 2 * _LANE * 4                             # double-buffered x + out tiles
    tr_cap = max(cr, (budget - 2 * wbytes - chunk_bytes) // per_row)

    tr = min(max(cr, tb // _LANE), r_need, tr_cap)
    # v7x megacore: if all the work fits one step but there is enough of it,
    # force >= 2 grid steps so the "parallel" axis can shard over both TCs.
    if tr >= r_need and r_need >= 2 * cr:
        tr = pl.cdiv(r_need, 2)
    tr = max(cr, (tr // cr) * cr)
    rp = pl.cdiv(r_need, tr) * tr
    n_chunks = tr // cr
    bp = rp * _LANE

    # Present the batch as a dense (rows, 128) slab; pad only when needed.
    # TODO(synk): callers that can produce/consume the (rows, 128) layout
    # directly would avoid this extra reshape/pad pass over x and out.
    x_flat = x.reshape(B)
    if bp != B:
        x_flat = jnp.pad(x_flat, (0, bp - B))
    x2d = x_flat.reshape(rp, _LANE)

    # Fold sigmoid's tanh form into the (tiny) weights:
    #   w2*sigmoid(w1*x + b1) = (0.5*w2)*tanh((0.5*w1)*x + 0.5*b1) + 0.5*w2
    # and fold sum_k 0.5*w2[k] into the fc4 bias. Pre-broadcast to (H, cr, 128)
    # so the kernel does no broadcasts at all (one dense DMA, VMEM-resident).
    w1h = jnp.broadcast_to((0.5 * w1).reshape(H, 1, 1), (H, cr, _LANE)).astype(act_dtype)
    b1h = jnp.broadcast_to((0.5 * b1).reshape(H, 1, 1), (H, cr, _LANE)).astype(act_dtype)
    w2h = jnp.broadcast_to((0.5 * w2).reshape(H, 1, 1), (H, cr, _LANE)).astype(act_dtype)
    b2s = (b2.reshape(()) + 0.5 * jnp.sum(w2)).reshape(1, 1).astype(jnp.float32)

    kernel = functools.partial(ournet_kernel, n_hid=H, cr=cr, n_chunks=n_chunks)

    out2d = pl.pallas_call(
        kernel,
        out_shape=jax.ShapeDtypeStruct((rp, _LANE), jnp.float32),
        grid=(rp // tr,),
        in_specs=[
            pl.BlockSpec((tr, _LANE), lambda i: (i, 0)),         # x tile (dense)
            pl.BlockSpec((H, cr, _LANE), lambda i: (0, 0, 0)),   # w1 (VMEM-resident)
            pl.BlockSpec((H, cr, _LANE), lambda i: (0, 0, 0)),   # b1
            pl.BlockSpec((H, cr, _LANE), lambda i: (0, 0, 0)),   # w2
            pl.BlockSpec(memory_space=pltpu.MemorySpace.SMEM),   # folded fc4 bias scalar
        ],
        out_specs=pl.BlockSpec((tr, _LANE), lambda i: (i, 0)),   # dense stores
        compiler_params=pltpu.CompilerParams(
            dimension_semantics=("parallel",),
        ),
    )(x2d, w1h, b1h, w2h, b2s)

    out = out2d.reshape(bp)
    if bp != B:
        out = out[:B]
    return out.reshape(B, 1)


def init_params(key, n_hid_n):
    """Deterministic init mimicking torch.nn.Linear's U(-1/sqrt(fan_in), 1/sqrt(fan_in))."""
    k1, k2, k3, k4 = jax.random.split(key, 4)
    bound1 = 1.0                                   # fc1: fan_in = 1
    w1 = jax.random.uniform(k1, (n_hid_n, 1), jnp.float32, -bound1, bound1)
    b1 = jax.random.uniform(k2, (n_hid_n, 1), jnp.float32, -bound1, bound1)
    bound2 = 1.0 / jnp.sqrt(float(n_hid_n))        # fc4: fan_in = H (weight stored as (H,1))
    w2 = jax.random.uniform(k3, (n_hid_n, 1), jnp.float32, -bound2, bound2)
    b2 = jax.random.uniform(k4, (1, 1), jnp.float32, -bound2, bound2)
    return w1, b1, w2, b2


def ournet_ref(x, w1, b1, w2, b2):
    """Pure-JAX reference matching the PyTorch forward."""
    h = jax.nn.sigmoid(x @ w1.T + b1.T)   # (B, H)
    return h @ w2 + b2                    # (B, 1)


if __name__ == "__main__":
    key = jax.random.PRNGKey(0)
    n_hid_n = 32
    batch = 8

    kx, kp = jax.random.split(key)
    x = jax.random.normal(kx, (batch, 1), jnp.float32)
    w1, b1, w2, b2 = init_params(kp, n_hid_n)
    ref = ournet_ref(x, w1, b1, w2, b2)

    # 1) Default path (bf16 fc1/sigmoid chain on v6e/v7x, f32 on v5e/older).
    out = jax.block_until_ready(ournet_forward(x, w1, b1, w2, b2))
    assert out.shape == (batch, 1)
    if _default_act_dtype() == jnp.dtype(jnp.bfloat16):
        assert jnp.allclose(out, ref, atol=8e-2, rtol=5e-2)
    else:
        assert jnp.allclose(out, ref, atol=1e-4, rtol=1e-4)

    # 2) Forced-f32 path at a larger batch: exercises the multi-step grid and the
    #    in-kernel chunk loop, with a tight tolerance against the reference.
    batch2 = 4096
    x2 = jax.random.normal(jax.random.PRNGKey(1), (batch2, 1), jnp.float32)
    ref2 = ournet_ref(x2, w1, b1, w2, b2)
    out2 = jax.block_until_ready(
        ournet_forward(x2, w1, b1, w2, b2, tb=2048, act_dtype=jnp.float32))
    assert out2.shape == (batch2, 1)
    assert jnp.allclose(out2, ref2, atol=1e-4, rtol=1e-4)

    print("KERNEL_OK")
</pallas_src>

<mosaic_0001>
module attributes {stable_mosaic.version = 11 : i64} {
  func.func @ournet_kernel(%arg0: i32, %arg1: memref<16x128xf32, #tpu.memory_space<vmem>>, %arg2: memref<32x16x128xbf16, #tpu.memory_space<vmem>>, %arg3: memref<32x16x128xbf16, #tpu.memory_space<vmem>>, %arg4: memref<32x16x128xbf16, #tpu.memory_space<vmem>>, %arg5: memref<1x1xf32, #tpu.memory_space<smem>>, %arg6: memref<16x128xf32, #tpu.memory_space<vmem>>) attributes {dimension_semantics = [#tpu.dimension_semantics<parallel>], iteration_bounds = array<i64: 1>, scalar_prefetch = 0 : i64, scratch_operands = 0 : i64, tpu.core_type = #tpu.core_type<tc>, window_params = [{transform_indices = @transform_0, window_bounds = array<i64: 16, 128>}, {pipeline_mode = #tpu.pipeline_mode<synchronous>, transform_indices = @transform_1, window_bounds = array<i64: 32, 16, 128>}, {pipeline_mode = #tpu.pipeline_mode<synchronous>, transform_indices = @transform_2, window_bounds = array<i64: 32, 16, 128>}, {pipeline_mode = #tpu.pipeline_mode<synchronous>, transform_indices = @transform_3, window_bounds = array<i64: 32, 16, 128>}, {transform_indices = @transform_4, window_bounds = array<i64: 1, 1>}, {transform_indices = @transform_5, window_bounds = array<i64: 16, 128>}]} {
    %c0 = arith.constant 0 : index
    %c0_0 = arith.constant 0 : index
    %0 = memref.load %arg5[%c0, %c0_0] : memref<1x1xf32, #tpu.memory_space<smem>>
    %c0_i32 = arith.constant 0 : i32
    %c1_i32 = arith.constant 1 : i32
    %1 = arith.muli %c0_i32, %c1_i32 : i32
    %c0_i32_1 = arith.constant 0 : i32
    %2 = arith.addi %c0_i32_1, %1 : i32
    %c16_i32 = arith.constant 16 : i32
    %3 = arith.muli %2, %c16_i32 : i32
    %4 = tpu.assume_multiple %3, 16 : i32
    %5 = arith.index_cast %4 : i32 to index
    %c0_2 = arith.constant 0 : index
    %6 = vector.load %arg1[%5, %c0_2] : memref<16x128xf32, #tpu.memory_space<vmem>>, vector<16x128xf32>
    %7 = arith.truncf %6 : vector<16x128xf32> to vector<16x128xbf16>
    %cst = arith.constant 0.000000e+00 : f32
    %8 = vector.broadcast %cst : f32 to vector<16x128xf32>
    %cst_3 = arith.constant 0.000000e+00 : f32
    %9 = vector.broadcast %cst_3 : f32 to vector<16x128xf32>
    %cst_4 = arith.constant 0.000000e+00 : f32
    %10 = vector.broadcast %cst_4 : f32 to vector<16x128xf32>
    %cst_5 = arith.constant 0.000000e+00 : f32
    %11 = vector.broadcast %cst_5 : f32 to vector<16x128xf32>
    %c0_6 = arith.constant 0 : index
    %c0_7 = arith.constant 0 : index
    %c0_8 = arith.constant 0 : index
    %12 = vector.load %arg2[%c0_6, %c0_7, %c0_8] : memref<32x16x128xbf16, #tpu.memory_space<vmem>>, vector<1x16x128xbf16>
    %13 = vector.shape_cast %12 : vector<1x16x128xbf16> to vector<16x128xbf16>
    %14 = arith.mulf %13, %7 : vector<16x128xbf16>
    %c0_9 = arith.constant 0 : index
    %c0_10 = arith.constant 0 : index
    %c0_11 = arith.constant 0 : index
    %15 = vector.load %arg3[%c0_9, %c0_10, %c0_11] : memref<32x16x128xbf16, #tpu.memory_space<vmem>>, vector<1x16x128xbf16>
    %16 = vector.shape_cast %15 : vector<1x16x128xbf16> to vector<16x128xbf16>
    %17 = arith.addf %14, %16 : vector<16x128xbf16>
    %18 = math.tanh %17 : vector<16x128xbf16>
    %c0_12 = arith.constant 0 : index
    %c0_13 = arith.constant 0 : index
    %c0_14 = arith.constant 0 : index
    %19 = vector.load %arg4[%c0_12, %c0_13, %c0_14] : memref<32x16x128xbf16, #tpu.memory_space<vmem>>, vector<1x16x128xbf16>
    %20 = vector.shape_cast %19 : vector<1x16x128xbf16> to vector<16x128xbf16>
    %21 = arith.mulf %18, %20 : vector<16x128xbf16>
    %22 = arith.extf %21 : vector<16x128xbf16> to vector<16x128xf32>
    %23 = arith.addf %8, %22 : vector<16x128xf32>
    %c1 = arith.constant 1 : index
    %c0_15 = arith.constant 0 : index
    %c0_16 = arith.constant 0 : index
    %24 = vector.load %arg2[%c1, %c0_15, %c0_16] : memref<32x16x128xbf16, #tpu.memory_space<vmem>>, vector<1x16x128xbf16>
    %25 = vector.shape_cast %24 : vector<1x16x128xbf16> to vector<16x128xbf16>
    %26 = arith.mulf %25, %7 : vector<16x128xbf16>
    %c1_17 = arith.constant 1 : index
    %c0_18 = arith.constant 0 : index
    %c0_19 = arith.constant 0 : index
    %27 = vector.load %arg3[%c1_17, %c0_18, %c0_19] : memref<32x16x128xbf16, #tpu.memory_space<vmem>>, vector<1x16x128xbf16>
    %28 = vector.shape_cast %27 : vector<1x16x128xbf16> to vector<16x128xbf16>
    %29 = arith.addf %26, %28 : vector<16x128xbf16>
    %30 = math.tanh %29 : vector<16x128xbf16>
    %c1_20 = arith.constant 1 : index
    %c0_21 = arith.constant 0 : index
    %c0_22 = arith.constant 0 : index
    %31 = vector.load %arg4[%c1_20, %c0_21, %c0_22] : memref<32x16x128xbf16, #tpu.memory_space<vmem>>, vector<1x16x128xbf16>
    %32 = vector.shape_cast %31 : vector<1x16x128xbf16> to vector<16x128xbf16>
    %33 = arith.mulf %30, %32 : vector<16x128xbf16>
    %34 = arith.extf %33 : vector<16x128xbf16> to vector<16x128xf32>
    %35 = arith.addf %9, %34 : vector<16x128xf32>
    %c2 = arith.constant 2 : index
    %c0_23 = arith.constant 0 : index
    %c0_24 = arith.constant 0 : index
    %36 = vector.load %arg2[%c2, %c0_23, %c0_24] : memref<32x16x128xbf16, #tpu.memory_space<vmem>>, vector<1x16x128xbf16>
    %37 = vector.shape_cast %36 : vector<1x16x128xbf16> to vector<16x128xbf16>
    %38 = arith.mulf %37, %7 : vector<16x128xbf16>
    %c2_25 = arith.constant 2 : index
    %c0_26 = arith.constant 0 : index
    %c0_27 = arith.constant 0 : index
    %39 = vector.load %arg3[%c2_25, %c0_26, %c0_27] : memref<32x16x128xbf16, #tpu.memory_space<vmem>>, vector<1x16x128xbf16>
    %40 = vector.shape_cast %39 : vector<1x16x128xbf16> to vector<16x128xbf16>
    %41 = arith.addf %38, %40 : vector<16x128xbf16>
    %42 = math.tanh %41 : vector<16x128xbf16>
    %c2_28 = arith.constant 2 : index
    %c0_29 = arith.constant 0 : index
    %c0_30 = arith.constant 0 : index
    %43 = vector.load %arg4[%c2_28, %c0_29, %c0_30] : memref<32x16x128xbf16, #tpu.memory_space<vmem>>, vector<1x16x128xbf16>
    %44 = vector.shape_cast %43 : vector<1x16x128xbf16> to vector<16x128xbf16>
    %45 = arith.mulf %42, %44 : vector<16x128xbf16>
    %46 = arith.extf %45 : vector<16x128xbf16> to vector<16x128xf32>
    %47 = arith.addf %10, %46 : vector<16x128xf32>
    %c3 = arith.constant 3 : index
    %c0_31 = arith.constant 0 : index
    %c0_32 = arith.constant 0 : index
    %48 = vector.load %arg2[%c3, %c0_31, %c0_32] : memref<32x16x128xbf16, #tpu.memory_space<vmem>>, vector<1x16x128xbf16>
    %49 = vector.shape_cast %48 : vector<1x16x128xbf16> to vector<16x128xbf16>
    %50 = arith.mulf %49, %7 : vector<16x128xbf16>
    %c3_33 = arith.constant 3 : index
    %c0_34 = arith.constant 0 : index
    %c0_35 = arith.constant 0 : index
    %51 = vector.load %arg3[%c3_33, %c0_34, %c0_35] : memref<32x16x128xbf16, #tpu.memory_space<vmem>>, vector<1x16x128xbf16>
    %52 = vector.shape_cast %51 : vector<1x16x128xbf16> to vector<16x128xbf16>
    %53 = arith.addf %50, %52 : vector<16x128xbf16>
    %54 = math.tanh %53 : vector<16x128xbf16>
    %c3_36 = arith.constant 3 : index
    %c0_37 = arith.constant 0 : index
    %c0_38 = arith.constant 0 : index
    %55 = vector.load %arg4[%c3_36, %c0_37, %c0_38] : memref<32x16x128xbf16, #tpu.memory_space<vmem>>, vector<1x16x128xbf16>
    %56 = vector.shape_cast %55 : vector<1x16x128xbf16> to vector<16x128xbf16>
    %57 = arith.mulf %54, %56 : vector<16x128xbf16>
    %58 = arith.extf %57 : vector<16x128xbf16> to vector<16x128xf32>
    %59 = arith.addf %11, %58 : vector<16x128xf32>
    %c4 = arith.constant 4 : index
    %c0_39 = arith.constant 0 : index
    %c0_40 = arith.constant 0 : index
    %60 = vector.load %arg2[%c4, %c0_39, %c0_40] : memref<32x16x128xbf16, #tpu.memory_space<vmem>>, vector<1x16x128xbf16>
    %61 = vector.shape_cast %60 : vector<1x16x128xbf16> to vector<16x128xbf16>
    %62 = arith.mulf %61, %7 : vector<16x128xbf16>
    %c4_41 = arith.constant 4 : index
    %c0_42 = arith.constant 0 : index
    %c0_43 = arith.constant 0 : index
    %63 = vector.load %arg3[%c4_41, %c0_42, %c0_43] : memref<32x16x128xbf16, #tpu.memory_space<vmem>>, vector<1x16x128xbf16>
    %64 = vector.shape_cast %63 : vector<1x16x128xbf16> to vector<16x128xbf16>
    %65 = arith.addf %62, %64 : vector<16x128xbf16>
    %66 = math.tanh %65 : vector<16x128xbf16>
    %c4_44 = arith.constant 4 : index
    %c0_45 = arith.constant 0 : index
    %c0_46 = arith.constant 0 : index
    %67 = vector.load %arg4[%c4_44, %c0_45, %c0_46] : memref<32x16x128xbf16, #tpu.memory_space<vmem>>, vector<1x16x128xbf16>
    %68 = vector.shape_cast %67 : vector<1x16x128xbf16> to vector<16x128xbf16>
    %69 = arith.mulf %66, %68 : vector<16x128xbf16>
    %70 = arith.extf %69 : vector<16x128xbf16> to vector<16x128xf32>
    %71 = arith.addf %23, %70 : vector<16x128xf32>
    %c5 = arith.constant 5 : index
    %c0_47 = arith.constant 0 : index
    %c0_48 = arith.constant 0 : index
    %72 = vector.load %arg2[%c5, %c0_47, %c0_48] : memref<32x16x128xbf16, #tpu.memory_space<vmem>>, vector<1x16x128xbf16>
    %73 = vector.shape_cast %72 : vector<1x16x128xbf16> to vector<16x128xbf16>
    %74 = arith.mulf %73, %7 : vector<16x128xbf16>
    %c5_49 = arith.constant 5 : index
    %c0_50 = arith.constant 0 : index
    %c0_51 = arith.constant 0 : index
    %75 = vector.load %arg3[%c5_49, %c0_50, %c0_51] : memref<32x16x128xbf16, #tpu.memory_space<vmem>>, vector<1x16x128xbf16>
    %76 = vector.shape_cast %75 : vector<1x16x128xbf16> to vector<16x128xbf16>
    %77 = arith.addf %74, %76 : vector<16x128xbf16>
    %78 = math.tanh %77 : vector<16x128xbf16>
    %c5_52 = arith.constant 5 : index
    %c0_53 = arith.constant 0 : index
    %c0_54 = arith.constant 0 : index
    %79 = vector.load %arg4[%c5_52, %c0_53, %c0_54] : memref<32x16x128xbf16, #tpu.memory_space<vmem>>, vector<1x16x128xbf16>
    %80 = vector.shape_cast %79 : vector<1x16x128xbf16> to vector<16x128xbf16>
    %81 = arith.mulf %78, %80 : vector<16x128xbf16>
    %82 = arith.extf %81 : vector<16x128xbf16> to vector<16x128xf32>
    %83 = arith.addf %35, %82 : vector<16x128xf32>
    %c6 = arith.constant 6 : index
    %c0_55 = arith.constant 0 : index
    %c0_56 = arith.constant 0 : index
    %84 = vector.load %arg2[%c6, %c0_55, %c0_56] : memref<32x16x128xbf16, #tpu.memory_space<vmem>>, vector<1x16x128xbf16>
    %85 = vector.shape_cast %84 : vector<1x16x128xbf16> to vector<16x128xbf16>
    %86 = arith.mulf %85, %7 : vector<16x128xbf16>
    %c6_57 = arith.constant 6 : index
    %c0_58 = arith.constant 0 : index
    %c0_59 = arith.constant 0 : index
    %87 = vector.load %arg3[%c6_57, %c0_58, %c0_59] : memref<32x16x128xbf16, #tpu.memory_space<vmem>>, vector<1x16x128xbf16>
    %88 = vector.shape_cast %87 : vector<1x16x128xbf16> to vector<16x128xbf16>
    %89 = arith.addf %86, %88 : vector<16x128xbf16>
    %90 = math.tanh %89 : vector<16x128xbf16>
    %c6_60 = arith.constant 6 : index
    %c0_61 = arith.constant 0 : index
    %c0_62 = arith.constant 0 : index
    %91 = vector.load %arg4[%c6_60, %c0_61, %c0_62] : memref<32x16x128xbf16, #tpu.memory_space<vmem>>, vector<1x16x128xbf16>
    %92 = vector.shape_cast %91 : vector<1x16x128xbf16> to vector<16x128xbf16>
    %93 = arith.mulf %90, %92 : vector<16x128xbf16>
    %94 = arith.extf %93 : vector<16x128xbf16> to vector<16x128xf32>
    %95 = arith.addf %47, %94 : vector<16x128xf32>
    %c7 = arith.constant 7 : index
    %c0_63 = arith.constant 0 : index
    %c0_64 = arith.constant 0 : index
    %96 = vector.load %arg2[%c7, %c0_63, %c0_64] : memref<32x16x128xbf16, #tpu.memory_space<vmem>>, vector<1x16x128xbf16>
    %97 = vector.shape_cast %96 : vector<1x16x128xbf16> to vector<16x128xbf16>
    %98 = arith.mulf %97, %7 : vector<16x128xbf16>
    %c7_65 = arith.constant 7 : index
    %c0_66 = arith.constant 0 : index
    %c0_67 = arith.constant 0 : index
    %99 = vector.load %arg3[%c7_65, %c0_66, %c0_67] : memref<32x16x128xbf16, #tpu.memory_space<vmem>>, vector<1x16x128xbf16>
    %100 = vector.shape_cast %99 : vector<1x16x128xbf16> to vector<16x128xbf16>
    %101 = arith.addf %98, %100 : vector<16x128xbf16>
    %102 = math.tanh %101 : vector<16x128xbf16>
    %c7_68 = arith.constant 7 : index
    %c0_69 = arith.constant 0 : index
    %c0_70 = arith.constant 0 : index
    %103 = vector.load %arg4[%c7_68, %c0_69, %c0_70] : memref<32x16x128xbf16, #tpu.memory_space<vmem>>, vector<1x16x128xbf16>
    %104 = vector.shape_cast %103 : vector<1x16x128xbf16> to vector<16x128xbf16>
    %105 = arith.mulf %102, %104 : vector<16x128xbf16>
    %106 = arith.extf %105 : vector<16x128xbf16> to vector<16x128xf32>
    %107 = arith.addf %59, %106 : vector<16x128xf32>
    %c8 = arith.constant 8 : index
    %c0_71 = arith.constant 0 : index
    %c0_72 = arith.constant 0 : index
    %108 = vector.load %arg2[%c8, %c0_71, %c0_72] : memref<32x16x128xbf16, #tpu.memory_space<vmem>>, vector<1x16x128xbf16>
    %109 = vector.shape_cast %108 : vector<1x16x128xbf16> to vector<16x128xbf16>
    %110 = arith.mulf %109, %7 : vector<16x128xbf16>
    %c8_73 = arith.constant 8 : index
    %c0_74 = arith.constant 0 : index
    %c0_75 = arith.constant 0 : index
    %111 = vector.load %arg3[%c8_73, %c0_74, %c0_75] : memref<32x16x128xbf16, #tpu.memory_space<vmem>>, vector<1x16x128xbf16>
    %112 = vector.shape_cast %111 : vector<1x16x128xbf16> to vector<16x128xbf16>
    %113 = arith.addf %110, %112 : vector<16x128xbf16>
    %114 = math.tanh %113 : vector<16x128xbf16>
    %c8_76 = arith.constant 8 : index
    %c0_77 = arith.constant 0 : index
    %c0_78 = arith.constant 0 : index
    %115 = vector.load %arg4[%c8_76, %c0_77, %c0_78] : memref<32x16x128xbf16, #tpu.memory_space<vmem>>, vector<1x16x128xbf16>
    %116 = vector.shape_cast %115 : vector<1x16x128xbf16> to vector<16x128xbf16>
    %117 = arith.mulf %114, %116 : vector<16x128xbf16>
    %118 = arith.extf %117 : vector<16x128xbf16> to vector<16x128xf32>
    %119 = arith.addf %71, %118 : vector<16x128xf32>
    %c9 = arith.constant 9 : index
    %c0_79 = arith.constant 0 : index
    %c0_80 = arith.constant 0 : index
    %120 = vector.load %arg2[%c9, %c0_79, %c0_80] : memref<32x16x128xbf16, #tpu.memory_space<vmem>>, vector<1x16x128xbf16>
    %121 = vector.shape_cast %120 : vector<1x16x128xbf16> to vector<16x128xbf16>
    %122 = arith.mulf %121, %7 : vector<16x128xbf16>
    %c9_81 = arith.constant 9 : index
    %c0_82 = arith.constant 0 : index
    %c0_83 = arith.constant 0 : index
    %123 = vector.load %arg3[%c9_81, %c0_82, %c0_83] : memref<32x16x128xbf16, #tpu.memory_space<vmem>>, vector<1x16x128xbf16>
    %124 = vector.shape_cast %123 : vector<1x16x128xbf16> to vector<16x128xbf16>
    %125 = arith.addf %122, %124 : vector<16x128xbf16>
    %126 = math.tanh %125 : vector<16x128xbf16>
    %c9_84 = arith.constant 9 : index
    %c0_85 = arith.constant 0 : index
    %c0_86 = arith.constant 0 : index
    %127 = vector.load %arg4[%c9_84, %c0_85, %c0_86] : memref<32x16x128xbf16, #tpu.memory_space<vmem>>, vector<1x16x128xbf16>
    %128 = vector.shape_cast %127 : vector<1x16x128xbf16> to vector<16x128xbf16>
    %129 = arith.mulf %126, %128 : vector<16x128xbf16>
    %130 = arith.extf %129 : vector<16x128xbf16> to vector<16x128xf32>
    %131 = arith.addf %83, %130 : vector<16x128xf32>
    %c10 = arith.constant 10 : index
    %c0_87 = arith.constant 0 : index
    %c0_88 = arith.constant 0 : index
    %132 = vector.load %arg2[%c10, %c0_87, %c0_88] : memref<32x16x128xbf16, #tpu.memory_space<vmem>>, vector<1x16x128xbf16>
    %133 = vector.shape_cast %132 : vector<1x16x128xbf16> to vector<16x128xbf16>
    %134 = arith.mulf %133, %7 : vector<16x128xbf16>
    %c10_89 = arith.constant 10 : index
    %c0_90 = arith.constant 0 : index
    %c0_91 = arith.constant 0 : index
    %135 = vector.load %arg3[%c10_89, %c0_90, %c0_91] : memref<32x16x128xbf16, #tpu.memory_space<vmem>>, vector<1x16x128xbf16>
    %136 = vector.shape_cast %135 : vector<1x16x128xbf16> to vector<16x128xbf16>
    %137 = arith.addf %134, %136 : vector<16x128xbf16>
    %138 = math.tanh %137 : vector<16x128xbf16>
    %c10_92 = arith.constant 10 : index
    %c0_93 = arith.constant 0 : index
    %c0_94 = arith.constant 0 : index
    %139 = vector.load %arg4[%c10_92, %c0_93, %c0_94] : memref<32x16x128xbf16, #tpu.memory_space<vmem>>, vector<1x16x128xbf16>
    %140 = vector.shape_cast %139 : vector<1x16x128xbf16> to vector<16x128xbf16>
    %141 = arith.mulf %138, %140 : vector<16x128xbf16>
    %142 = arith.extf %141 : vector<16x128xbf16> to vector<16x128xf32>
    %143 = arith.addf %95, %142 : vector<16x128xf32>
    %c11 = arith.constant 11 : index
    %c0_95 = arith.constant 0 : index
    %c0_96 = arith.constant 0 : index
    %144 = vector.load %arg2[%c11, %c0_95, %c0_96] : memref<32x16x128xbf16, #tpu.memory_space<vmem>>, vector<1x16x128xbf16>
    %145 = vector.shape_cast %144 : vector<1x16x128xbf16> to vector<16x128xbf16>
    %146 = arith.mulf %145, %7 : vector<16x128xbf16>
    %c11_97 = arith.constant 11 : index
    %c0_98 = arith.constant 0 : index
    %c0_99 = arith.constant 0 : index
    %147 = vector.load %arg3[%c11_97, %c0_98, %c0_99] : memref<32x16x128xbf16, #tpu.memory_space<vmem>>, vector<1x16x128xbf16>
    %148 = vector.shape_cast %147 : vector<1x16x128xbf16> to vector<16x128xbf16>
    %149 = arith.addf %146, %148 : vector<16x128xbf16>
    %150 = math.tanh %149 : vector<16x128xbf16>
    %c11_100 = arith.constant 11 : index
    %c0_101 = arith.constant 0 : index
    %c0_102 = arith.constant 0 : index
    %151 = vector.load %arg4[%c11_100, %c0_101, %c0_102] : memref<32x16x128xbf16, #tpu.memory_space<vmem>>, vector<1x16x128xbf16>
    %152 = vector.shape_cast %151 : vector<1x16x128xbf16> to vector<16x128xbf16>
    %153 = arith.mulf %150, %152 : vector<16x128xbf16>
    %154 = arith.extf %153 : vector<16x128xbf16> to vector<16x128xf32>
    %155 = arith.addf %107, %154 : vector<16x128xf32>
    %c12 = arith.constant 12 : index
    %c0_103 = arith.constant 0 : index
    %c0_104 = arith.constant 0 : index
    %156 = vector.load %arg2[%c12, %c0_103, %c0_104] : memref<32x16x128xbf16, #tpu.memory_space<vmem>>, vector<1x16x128xbf16>
    %157 = vector.shape_cast %156 : vector<1x16x128xbf16> to vector<16x128xbf16>
    %158 = arith.mulf %157, %7 : vector<16x128xbf16>
    %c12_105 = arith.constant 12 : index
    %c0_106 = arith.constant 0 : index
    %c0_107 = arith.constant 0 : index
    %159 = vector.load %arg3[%c12_105, %c0_106, %c0_107] : memref<32x16x128xbf16, #tpu.memory_space<vmem>>, vector<1x16x128xbf16>
    %160 = vector.shape_cast %159 : vector<1x16x128xbf16> to vector<16x128xbf16>
    %161 = arith.addf %158, %160 : vector<16x128xbf16>
    %162 = math.tanh %161 : vector<16x128xbf16>
    %c12_108 = arith.constant 12 : index
    %c0_109 = arith.constant 0 : index
    %c0_110 = arith.constant 0 : index
    %163 = vector.load %arg4[%c12_108, %c0_109, %c0_110] : memref<32x16x128xbf16, #tpu.memory_space<vmem>>, vector<1x16x128xbf16>
    %164 = vector.shape_cast %163 : vector<1x16x128xbf16> to vector<16x128xbf16>
    %165 = arith.mulf %162, %164 : vector<16x128xbf16>
    %166 = arith.extf %165 : vector<16x128xbf16> to vector<16x128xf32>
    %167 = arith.addf %119, %166 : vector<16x128xf32>
    %c13 = arith.constant 13 : index
    %c0_111 = arith.constant 0 : index
    %c0_112 = arith.constant 0 : index
    %168 = vector.load %arg2[%c13, %c0_111, %c0_112] : memref<32x16x128xbf16, #tpu.memory_space<vmem>>, vector<1x16x128xbf16>
    %169 = vector.shape_cast %168 : vector<1x16x128xbf16> to vector<16x128xbf16>
    %170 = arith.mulf %169, %7 : vector<16x128xbf16>
    %c13_113 = arith.constant 13 : index
    %c0_114 = arith.constant 0 : index
    %c0_115 = arith.constant 0 : index
    %171 = vector.load %arg3[%c13_113, %c0_114, %c0_115] : memref<32x16x128xbf16, #tpu.memory_space<vmem>>, vector<1x16x128xbf16>
    %172 = vector.shape_cast %171 : vector<1x16x128xbf16> to vector<16x128xbf16>
    %173 = arith.addf %170, %172 : vector<16x128xbf16>
    %174 = math.tanh %173 : vector<16x128xbf16>
    %c13_116 = arith.constant 13 : index
    %c0_117 = arith.constant 0 : index
    %c0_118 = arith.constant 0 : index
    %175 = vector.load %arg4[%c13_116, %c0_117, %c0_118] : memref<32x16x128xbf16, #tpu.memory_space<vmem>>, vector<1x16x128xbf16>
    %176 = vector.shape_cast %175 : vector<1x16x128xbf16> to vector<16x128xbf16>
    %177 = arith.mulf %174, %176 : vector<16x128xbf16>
    %178 = arith.extf %177 : vector<16x128xbf16> to vector<16x128xf32>
    %179 = arith.addf %131, %178 : vector<16x128xf32>
    %c14 = arith.constant 14 : index
    %c0_119 = arith.constant 0 : index
    %c0_120 = arith.constant 0 : index
    %180 = vector.load %arg2[%c14, %c0_119, %c0_120] : memref<32x16x128xbf16, #tpu.memory_space<vmem>>, vector<1x16x128xbf16>
    %181 = vector.shape_cast %180 : vector<1x16x128xbf16> to vector<16x128xbf16>
    %182 = arith.mulf %181, %7 : vector<16x128xbf16>
    %c14_121 = arith.constant 14 : index
    %c0_122 = arith.constant 0 : index
    %c0_123 = arith.constant 0 : index
    %183 = vector.load %arg3[%c14_121, %c0_122, %c0_123] : memref<32x16x128xbf16, #tpu.memory_space<vmem>>, vector<1x16x128xbf16>
    %184 = vector.shape_cast %183 : vector<1x16x128xbf16> to vector<16x128xbf16>
    %185 = arith.addf %182, %184 : vector<16x128xbf16>
    %186 = math.tanh %185 : vector<16x128xbf16>
    %c14_124 = arith.constant 14 : index
    %c0_125 = arith.constant 0 : index
    %c0_126 = arith.constant 0 : index
    %187 = vector.load %arg4[%c14_124, %c0_125, %c0_126] : memref<32x16x128xbf16, #tpu.memory_space<vmem>>, vector<1x16x128xbf16>
    %188 = vector.shape_cast %187 : vector<1x16x128xbf16> to vector<16x128xbf16>
    %189 = arith.mulf %186, %188 : vector<16x128xbf16>
    %190 = arith.extf %189 : vector<16x128xbf16> to vector<16x128xf32>
    %191 = arith.addf %143, %190 : vector<16x128xf32>
    %c15 = arith.constant 15 : index
    %c0_127 = arith.constant 0 : index
    %c0_128 = arith.constant 0 : index
    %192 = vector.load %arg2[%c15, %c0_127, %c0_128] : memref<32x16x128xbf16, #tpu.memory_space<vmem>>, vector<1x16x128xbf16>
    %193 = vector.shape_cast %192 : vector<1x16x128xbf16> to vector<16x128xbf16>
    %194 = arith.mulf %193, %7 : vector<16x128xbf16>
    %c15_129 = arith.constant 15 : index
    %c0_130 = arith.constant 0 : index
    %c0_131 = arith.constant 0 : index
    %195 = vector.load %arg3[%c15_129, %c0_130, %c0_131] : memref<32x16x128xbf16, #tpu.memory_space<vmem>>, vector<1x16x128xbf16>
    %196 = vector.shape_cast %195 : vector<1x16x128xbf16> to vector<16x128xbf16>
    %197 = arith.addf %194, %196 : vector<16x128xbf16>
    %198 = math.tanh %197 : vector<16x128xbf16>
    %c15_132 = arith.constant 15 : index
    %c0_133 = arith.constant 0 : index
    %c0_134 = arith.constant 0 : index
    %199 = vector.load %arg4[%c15_132, %c0_133, %c0_134] : memref<32x16x128xbf16, #tpu.memory_space<vmem>>, vector<1x16x128xbf16>
    %200 = vector.shape_cast %199 : vector<1x16x128xbf16> to vector<16x128xbf16>
    %201 = arith.mulf %198, %200 : vector<16x128xbf16>
    %202 = arith.extf %201 : vector<16x128xbf16> to vector<16x128xf32>
    %203 = arith.addf %155, %202 : vector<16x128xf32>
    %c16 = arith.constant 16 : index
    %c0_135 = arith.constant 0 : index
    %c0_136 = arith.constant 0 : index
    %204 = vector.load %arg2[%c16, %c0_135, %c0_136] : memref<32x16x128xbf16, #tpu.memory_space<vmem>>, vector<1x16x128xbf16>
    %205 = vector.shape_cast %204 : vector<1x16x128xbf16> to vector<16x128xbf16>
    %206 = arith.mulf %205, %7 : vector<16x128xbf16>
    %c16_137 = arith.constant 16 : index
    %c0_138 = arith.constant 0 : index
    %c0_139 = arith.constant 0 : index
    %207 = vector.load %arg3[%c16_137, %c0_138, %c0_139] : memref<32x16x128xbf16, #tpu.memory_space<vmem>>, vector<1x16x128xbf16>
    %208 = vector.shape_cast %207 : vector<1x16x128xbf16> to vector<16x128xbf16>
    %209 = arith.addf %206, %208 : vector<16x128xbf16>
    %210 = math.tanh %209 : vector<16x128xbf16>
    %c16_140 = arith.constant 16 : index
    %c0_141 = arith.constant 0 : index
    %c0_142 = arith.constant 0 : index
    %211 = vector.load %arg4[%c16_140, %c0_141, %c0_142] : memref<32x16x128xbf16, #tpu.memory_space<vmem>>, vector<1x16x128xbf16>
    %212 = vector.shape_cast %211 : vector<1x16x128xbf16> to vector<16x128xbf16>
    %213 = arith.mulf %210, %212 : vector<16x128xbf16>
    %214 = arith.extf %213 : vector<16x128xbf16> to vector<16x128xf32>
    %215 = arith.addf %167, %214 : vector<16x128xf32>
    %c17 = arith.constant 17 : index
    %c0_143 = arith.constant 0 : index
    %c0_144 = arith.constant 0 : index
    %216 = vector.load %arg2[%c17, %c0_143, %c0_144] : memref<32x16x128xbf16, #tpu.memory_space<vmem>>, vector<1x16x128xbf16>
    %217 = vector.shape_cast %216 : vector<1x16x128xbf16> to vector<16x128xbf16>
    %218 = arith.mulf %217, %7 : vector<16x128xbf16>
    %c17_145 = arith.constant 17 : index
    %c0_146 = arith.constant 0 : index
    %c0_147 = arith.constant 0 : index
    %219 = vector.load %arg3[%c17_145, %c0_146, %c0_147] : memref<32x16x128xbf16, #tpu.memory_space<vmem>>, vector<1x16x128xbf16>
    %220 = vector.shape_cast %219 : vector<1x16x128xbf16> to vector<16x128xbf16>
    %221 = arith.addf %218, %220 : vector<16x128xbf16>
    %222 = math.tanh %221 : vector<16x128xbf16>
    %c17_148 = arith.constant 17 : index
    %c0_149 = arith.constant 0 : index
    %c0_150 = arith.constant 0 : index
    %223 = vector.load %arg4[%c17_148, %c0_149, %c0_150] : memref<32x16x128xbf16, #tpu.memory_space<vmem>>, vector<1x16x128xbf16>
    %224 = vector.shape_cast %223 : vector<1x16x128xbf16> to vector<16x128xbf16>
    %225 = arith.mulf %222, %224 : vector<16x128xbf16>
    %226 = arith.extf %225 : vector<16x128xbf16> to vector<16x128xf32>
    %227 = arith.addf %179, %226 : vector<16x128xf32>
    %c18 = arith.constant 18 : index
    %c0_151 = arith.constant 0 : index
    %c0_152 = arith.constant 0 : index
    %228 = vector.load %arg2[%c18, %c0_151, %c0_152] : memref<32x16x128xbf16, #tpu.memory_space<vmem>>, vector<1x16x128xbf16>
    %229 = vector.shape_cast %228 : vector<1x16x128xbf16> to vector<16x128xbf16>
    %230 = arith.mulf %229, %7 : vector<16x128xbf16>
    %c18_153 = arith.constant 18 : index
    %c0_154 = arith.constant 0 : index
    %c0_155 = arith.constant 0 : index
    %231 = vector.load %arg3[%c18_153, %c0_154, %c0_155] : memref<32x16x128xbf16, #tpu.memory_space<vmem>>, vector<1x16x128xbf16>
    %232 = vector.shape_cast %231 : vector<1x16x128xbf16> to vector<16x128xbf16>
    %233 = arith.addf %230, %232 : vector<16x128xbf16>
    %234 = math.tanh %233 : vector<16x128xbf16>
    %c18_156 = arith.constant 18 : index
    %c0_157 = arith.constant 0 : index
    %c0_158 = arith.constant 0 : index
    %235 = vector.load %arg4[%c18_156, %c0_157, %c0_158] : memref<32x16x128xbf16, #tpu.memory_space<vmem>>, vector<1x16x128xbf16>
    %236 = vector.shape_cast %235 : vector<1x16x128xbf16> to vector<16x128xbf16>
    %237 = arith.mulf %234, %236 : vector<16x128xbf16>
    %238 = arith.extf %237 : vector<16x128xbf16> to vector<16x128xf32>
    %239 = arith.addf %191, %238 : vector<16x128xf32>
    %c19 = arith.constant 19 : index
    %c0_159 = arith.constant 0 : index
    %c0_160 = arith.constant 0 : index
    %240 = vector.load %arg2[%c19, %c0_159, %c0_160] : memref<32x16x128xbf16, #tpu.memory_space<vmem>>, vector<1x16x128xbf16>
    %241 = vector.shape_cast %240 : vector<1x16x128xbf16> to vector<16x128xbf16>
    %242 = arith.mulf %241, %7 : vector<16x128xbf16>
    %c19_161 = arith.constant 19 : index
    %c0_162 = arith.constant 0 : index
    %c0_163 = arith.constant 0 : index
    %243 = vector.load %arg3[%c19_161, %c0_162, %c0_163] : memref<32x16x128xbf16, #tpu.memory_space<vmem>>, vector<1x16x128xbf16>
    %244 = vector.shape_cast %243 : vector<1x16x128xbf16> to vector<16x128xbf16>
    %245 = arith.addf %242, %244 : vector<16x128xbf16>
    %246 = math.tanh %245 : vector<16x128xbf16>
    %c19_164 = arith.constant 19 : index
    %c0_165 = arith.constant 0 : index
    %c0_166 = arith.constant 0 : index
    %247 = vector.load %arg4[%c19_164, %c0_165, %c0_166] : memref<32x16x128xbf16, #tpu.memory_space<vmem>>, vector<1x16x128xbf16>
    %248 = vector.shape_cast %247 : vector<1x16x128xbf16> to vector<16x128xbf16>
    %249 = arith.mulf %246, %248 : vector<16x128xbf16>
    %250 = arith.extf %249 : vector<16x128xbf16> to vector<16x128xf32>
    %251 = arith.addf %203, %250 : vector<16x128xf32>
    %c20 = arith.constant 20 : index
    %c0_167 = arith.constant 0 : index
    %c0_168 = arith.constant 0 : index
    %252 = vector.load %arg2[%c20, %c0_167, %c0_168] : memref<32x16x128xbf16, #tpu.memory_space<vmem>>, vector<1x16x128xbf16>
    %253 = vector.shape_cast %252 : vector<1x16x128xbf16> to vector<16x128xbf16>
    %254 = arith.mulf %253, %7 : vector<16x128xbf16>
    %c20_169 = arith.constant 20 : index
    %c0_170 = arith.constant 0 : index
    %c0_171 = arith.constant 0 : index
    %255 = vector.load %arg3[%c20_169, %c0_170, %c0_171] : memref<32x16x128xbf16, #tpu.memory_space<vmem>>, vector<1x16x128xbf16>
    %256 = vector.shape_cast %255 : vector<1x16x128xbf16> to vector<16x128xbf16>
    %257 = arith.addf %254, %256 : vector<16x128xbf16>
    %258 = math.tanh %257 : vector<16x128xbf16>
    %c20_172 = arith.constant 20 : index
    %c0_173 = arith.constant 0 : index
    %c0_174 = arith.constant 0 : index
    %259 = vector.load %arg4[%c20_172, %c0_173, %c0_174] : memref<32x16x128xbf16, #tpu.memory_space<vmem>>, vector<1x16x128xbf16>
    %260 = vector.shape_cast %259 : vector<1x16x128xbf16> to vector<16x128xbf16>
    %261 = arith.mulf %258, %260 : vector<16x128xbf16>
    %262 = arith.extf %261 : vector<16x128xbf16> to vector<16x128xf32>
    %263 = arith.addf %215, %262 : vector<16x128xf32>
    %c21 = arith.constant 21 : index
    %c0_175 = arith.constant 0 : index
    %c0_176 = arith.constant 0 : index
    %264 = vector.load %arg2[%c21, %c0_175, %c0_176] : memref<32x16x128xbf16, #tpu.memory_space<vmem>>, vector<1x16x128xbf16>
    %265 = vector.shape_cast %264 : vector<1x16x128xbf16> to vector<16x128xbf16>
    %266 = arith.mulf %265, %7 : vector<16x128xbf16>
    %c21_177 = arith.constant 21 : index
    %c0_178 = arith.constant 0 : index
    %c0_179 = arith.constant 0 : index
    %267 = vector.load %arg3[%c21_177, %c0_178, %c0_179] : memref<32x16x128xbf16, #tpu.memory_space<vmem>>, vector<1x16x128xbf16>
    %268 = vector.shape_cast %267 : vector<1x16x128xbf16> to vector<16x128xbf16>
    %269 = arith.addf %266, %268 : vector<16x128xbf16>
    %270 = math.tanh %269 : vector<16x128xbf16>
    %c21_180 = arith.constant 21 : index
    %c0_181 = arith.constant 0 : index
    %c0_182 = arith.constant 0 : index
    %271 = vector.load %arg4[%c21_180, %c0_181, %c0_182] : memref<32x16x128xbf16, #tpu.memory_space<vmem>>, vector<1x16x128xbf16>
    %272 = vector.shape_cast %271 : vector<1x16x128xbf16> to vector<16x128xbf16>
    %273 = arith.mulf %270, %272 : vector<16x128xbf16>
    %274 = arith.extf %273 : vector<16x128xbf16> to vector<16x128xf32>
    %275 = arith.addf %227, %274 : vector<16x128xf32>
    %c22 = arith.constant 22 : index
    %c0_183 = arith.constant 0 : index
    %c0_184 = arith.constant 0 : index
    %276 = vector.load %arg2[%c22, %c0_183, %c0_184] : memref<32x16x128xbf16, #tpu.memory_space<vmem>>, vector<1x16x128xbf16>
    %277 = vector.shape_cast %276 : vector<1x16x128xbf16> to vector<16x128xbf16>
    %278 = arith.mulf %277, %7 : vector<16x128xbf16>
    %c22_185 = arith.constant 22 : index
    %c0_186 = arith.constant 0 : index
    %c0_187 = arith.constant 0 : index
    %279 = vector.load %arg3[%c22_185, %c0_186, %c0_187] : memref<32x16x128xbf16, #tpu.memory_space<vmem>>, vector<1x16x128xbf16>
    %280 = vector.shape_cast %279 : vector<1x16x128xbf16> to vector<16x128xbf16>
    %281 = arith.addf %278, %280 : vector<16x128xbf16>
    %282 = math.tanh %281 : vector<16x128xbf16>
    %c22_188 = arith.constant 22 : index
    %c0_189 = arith.constant 0 : index
    %c0_190 = arith.constant 0 : index
    %283 = vector.load %arg4[%c22_188, %c0_189, %c0_190] : memref<32x16x128xbf16, #tpu.memory_space<vmem>>, vector<1x16x128xbf16>
    %284 = vector.shape_cast %283 : vector<1x16x128xbf16> to vector<16x128xbf16>
    %285 = arith.mulf %282, %284 : vector<16x128xbf16>
    %286 = arith.extf %285 : vector<16x128xbf16> to vector<16x128xf32>
    %287 = arith.addf %239, %286 : vector<16x128xf32>
    %c23 = arith.constant 23 : index
    %c0_191 = arith.constant 0 : index
    %c0_192 = arith.constant 0 : index
    %288 = vector.load %arg2[%c23, %c0_191, %c0_192] : memref<32x16x128xbf16, #tpu.memory_space<vmem>>, vector<1x16x128xbf16>
    %289 = vector.shape_cast %288 : vector<1x16x128xbf16> to vector<16x128xbf16>
    %290 = arith.mulf %289, %7 : vector<16x128xbf16>
    %c23_193 = arith.constant 23 : index
    %c0_194 = arith.constant 0 : index
    %c0_195 = arith.constant 0 : index
    %291 = vector.load %arg3[%c23_193, %c0_194, %c0_195] : memref<32x16x128xbf16, #tpu.memory_space<vmem>>, vector<1x16x128xbf16>
    %292 = vector.shape_cast %291 : vector<1x16x128xbf16> to vector<16x128xbf16>
    %293 = arith.addf %290, %292 : vector<16x128xbf16>
    %294 = math.tanh %293 : vector<16x128xbf16>
    %c23_196 = arith.constant 23 : index
    %c0_197 = arith.constant 0 : index
    %c0_198 = arith.constant 0 : index
    %295 = vector.load %arg4[%c23_196, %c0_197, %c0_198] : memref<32x16x128xbf16, #tpu.memory_space<vmem>>, vector<1x16x128xbf16>
    %296 = vector.shape_cast %295 : vector<1x16x128xbf16> to vector<16x128xbf16>
    %297 = arith.mulf %294, %296 : vector<16x128xbf16>
    %298 = arith.extf %297 : vector<16x128xbf16> to vector<16x128xf32>
    %299 = arith.addf %251, %298 : vector<16x128xf32>
    %c24 = arith.constant 24 : index
    %c0_199 = arith.constant 0 : index
    %c0_200 = arith.constant 0 : index
    %300 = vector.load %arg2[%c24, %c0_199, %c0_200] : memref<32x16x128xbf16, #tpu.memory_space<vmem>>, vector<1x16x128xbf16>
    %301 = vector.shape_cast %300 : vector<1x16x128xbf16> to vector<16x128xbf16>
    %302 = arith.mulf %301, %7 : vector<16x128xbf16>
    %c24_201 = arith.constant 24 : index
    %c0_202 = arith.constant 0 : index
    %c0_203 = arith.constant 0 : index
    %303 = vector.load %arg3[%c24_201, %c0_202, %c0_203] : memref<32x16x128xbf16, #tpu.memory_space<vmem>>, vector<1x16x128xbf16>
    %304 = vector.shape_cast %303 : vector<1x16x128xbf16> to vector<16x128xbf16>
    %305 = arith.addf %302, %304 : vector<16x128xbf16>
    %306 = math.tanh %305 : vector<16x128xbf16>
    %c24_204 = arith.constant 24 : index
    %c0_205 = arith.constant 0 : index
    %c0_206 = arith.constant 0 : index
    %307 = vector.load %arg4[%c24_204, %c0_205, %c0_206] : memref<32x16x128xbf16, #tpu.memory_space<vmem>>, vector<1x16x128xbf16>
    %308 = vector.shape_cast %307 : vector<1x16x128xbf16> to vector<16x128xbf16>
    %309 = arith.mulf %306, %308 : vector<16x128xbf16>
    %310 = arith.extf %309 : vector<16x128xbf16> to vector<16x128xf32>
    %311 = arith.addf %263, %310 : vector<16x128xf32>
    %c25 = arith.constant 25 : index
    %c0_207 = arith.constant 0 : index
    %c0_208 = arith.constant 0 : index
    %312 = vector.load %arg2[%c25, %c0_207, %c0_208] : memref<32x16x128xbf16, #tpu.memory_space<vmem>>, vector<1x16x128xbf16>
    %313 = vector.shape_cast %312 : vector<1x16x128xbf16> to vector<16x128xbf16>
    %314 = arith.mulf %313, %7 : vector<16x128xbf16>
    %c25_209 = arith.constant 25 : index
    %c0_210 = arith.constant 0 : index
    %c0_211 = arith.constant 0 : index
    %315 = vector.load %arg3[%c25_209, %c0_210, %c0_211] : memref<32x16x128xbf16, #tpu.memory_space<vmem>>, vector<1x16x128xbf16>
    %316 = vector.shape_cast %315 : vector<1x16x128xbf16> to vector<16x128xbf16>
    %317 = arith.addf %314, %316 : vector<16x128xbf16>
    %318 = math.tanh %317 : vector<16x128xbf16>
    %c25_212 = arith.constant 25 : index
    %c0_213 = arith.constant 0 : index
    %c0_214 = arith.constant 0 : index
    %319 = vector.load %arg4[%c25_212, %c0_213, %c0_214] : memref<32x16x128xbf16, #tpu.memory_space<vmem>>, vector<1x16x128xbf16>
    %320 = vector.shape_cast %319 : vector<1x16x128xbf16> to vector<16x128xbf16>
    %321 = arith.mulf %318, %320 : vector<16x128xbf16>
    %322 = arith.extf %321 : vector<16x128xbf16> to vector<16x128xf32>
    %323 = arith.addf %275, %322 : vector<16x128xf32>
    %c26 = arith.constant 26 : index
    %c0_215 = arith.constant 0 : index
    %c0_216 = arith.constant 0 : index
    %324 = vector.load %arg2[%c26, %c0_215, %c0_216] : memref<32x16x128xbf16, #tpu.memory_space<vmem>>, vector<1x16x128xbf16>
    %325 = vector.shape_cast %324 : vector<1x16x128xbf16> to vector<16x128xbf16>
    %326 = arith.mulf %325, %7 : vector<16x128xbf16>
    %c26_217 = arith.constant 26 : index
    %c0_218 = arith.constant 0 : index
    %c0_219 = arith.constant 0 : index
    %327 = vector.load %arg3[%c26_217, %c0_218, %c0_219] : memref<32x16x128xbf16, #tpu.memory_space<vmem>>, vector<1x16x128xbf16>
    %328 = vector.shape_cast %327 : vector<1x16x128xbf16> to vector<16x128xbf16>
    %329 = arith.addf %326, %328 : vector<16x128xbf16>
    %330 = math.tanh %329 : vector<16x128xbf16>
    %c26_220 = arith.constant 26 : index
    %c0_221 = arith.constant 0 : index
    %c0_222 = arith.constant 0 : index
    %331 = vector.load %arg4[%c26_220, %c0_221, %c0_222] : memref<32x16x128xbf16, #tpu.memory_space<vmem>>, vector<1x16x128xbf16>
    %332 = vector.shape_cast %331 : vector<1x16x128xbf16> to vector<16x128xbf16>
    %333 = arith.mulf %330, %332 : vector<16x128xbf16>
    %334 = arith.extf %333 : vector<16x128xbf16> to vector<16x128xf32>
    %335 = arith.addf %287, %334 : vector<16x128xf32>
    %c27 = arith.constant 27 : index
    %c0_223 = arith.constant 0 : index
    %c0_224 = arith.constant 0 : index
    %336 = vector.load %arg2[%c27, %c0_223, %c0_224] : memref<32x16x128xbf16, #tpu.memory_space<vmem>>, vector<1x16x128xbf16>
    %337 = vector.shape_cast %336 : vector<1x16x128xbf16> to vector<16x128xbf16>
    %338 = arith.mulf %337, %7 : vector<16x128xbf16>
    %c27_225 = arith.constant 27 : index
    %c0_226 = arith.constant 0 : index
    %c0_227 = arith.constant 0 : index
    %339 = vector.load %arg3[%c27_225, %c0_226, %c0_227] : memref<32x16x128xbf16, #tpu.memory_space<vmem>>, vector<1x16x128xbf16>
    %340 = vector.shape_cast %339 : vector<1x16x128xbf16> to vector<16x128xbf16>
    %341 = arith.addf %338, %340 : vector<16x128xbf16>
    %342 = math.tanh %341 : vector<16x128xbf16>
    %c27_228 = arith.constant 27 : index
    %c0_229 = arith.constant 0 : index
    %c0_230 = arith.constant 0 : index
    %343 = vector.load %arg4[%c27_228, %c0_229, %c0_230] : memref<32x16x128xbf16, #tpu.memory_space<vmem>>, vector<1x16x128xbf16>
    %344 = vector.shape_cast %343 : vector<1x16x128xbf16> to vector<16x128xbf16>
    %345 = arith.mulf %342, %344 : vector<16x128xbf16>
    %346 = arith.extf %345 : vector<16x128xbf16> to vector<16x128xf32>
    %347 = arith.addf %299, %346 : vector<16x128xf32>
    %c28 = arith.constant 28 : index
    %c0_231 = arith.constant 0 : index
    %c0_232 = arith.constant 0 : index
    %348 = vector.load %arg2[%c28, %c0_231, %c0_232] : memref<32x16x128xbf16, #tpu.memory_space<vmem>>, vector<1x16x128xbf16>
    %349 = vector.shape_cast %348 : vector<1x16x128xbf16> to vector<16x128xbf16>
    %350 = arith.mulf %349, %7 : vector<16x128xbf16>
    %c28_233 = arith.constant 28 : index
    %c0_234 = arith.constant 0 : index
    %c0_235 = arith.constant 0 : index
    %351 = vector.load %arg3[%c28_233, %c0_234, %c0_235] : memref<32x16x128xbf16, #tpu.memory_space<vmem>>, vector<1x16x128xbf16>
    %352 = vector.shape_cast %351 : vector<1x16x128xbf16> to vector<16x128xbf16>
    %353 = arith.addf %350, %352 : vector<16x128xbf16>
    %354 = math.tanh %353 : vector<16x128xbf16>
    %c28_236 = arith.constant 28 : index
    %c0_237 = arith.constant 0 : index
    %c0_238 = arith.constant 0 : index
    %355 = vector.load %arg4[%c28_236, %c0_237, %c0_238] : memref<32x16x128xbf16, #tpu.memory_space<vmem>>, vector<1x16x128xbf16>
    %356 = vector.shape_cast %355 : vector<1x16x128xbf16> to vector<16x128xbf16>
    %357 = arith.mulf %354, %356 : vector<16x128xbf16>
    %358 = arith.extf %357 : vector<16x128xbf16> to vector<16x128xf32>
    %359 = arith.addf %311, %358 : vector<16x128xf32>
    %c29 = arith.constant 29 : index
    %c0_239 = arith.constant 0 : index
    %c0_240 = arith.constant 0 : index
    %360 = vector.load %arg2[%c29, %c0_239, %c0_240] : memref<32x16x128xbf16, #tpu.memory_space<vmem>>, vector<1x16x128xbf16>
    %361 = vector.shape_cast %360 : vector<1x16x128xbf16> to vector<16x128xbf16>
    %362 = arith.mulf %361, %7 : vector<16x128xbf16>
    %c29_241 = arith.constant 29 : index
    %c0_242 = arith.constant 0 : index
    %c0_243 = arith.constant 0 : index
    %363 = vector.load %arg3[%c29_241, %c0_242, %c0_243] : memref<32x16x128xbf16, #tpu.memory_space<vmem>>, vector<1x16x128xbf16>
    %364 = vector.shape_cast %363 : vector<1x16x128xbf16> to vector<16x128xbf16>
    %365 = arith.addf %362, %364 : vector<16x128xbf16>
    %366 = math.tanh %365 : vector<16x128xbf16>
    %c29_244 = arith.constant 29 : index
    %c0_245 = arith.constant 0 : index
    %c0_246 = arith.constant 0 : index
    %367 = vector.load %arg4[%c29_244, %c0_245, %c0_246] : memref<32x16x128xbf16, #tpu.memory_space<vmem>>, vector<1x16x128xbf16>
    %368 = vector.shape_cast %367 : vector<1x16x128xbf16> to vector<16x128xbf16>
    %369 = arith.mulf %366, %368 : vector<16x128xbf16>
    %370 = arith.extf %369 : vector<16x128xbf16> to vector<16x128xf32>
    %371 = arith.addf %323, %370 : vector<16x128xf32>
    %c30 = arith.constant 30 : index
    %c0_247 = arith.constant 0 : index
    %c0_248 = arith.constant 0 : index
    %372 = vector.load %arg2[%c30, %c0_247, %c0_248] : memref<32x16x128xbf16, #tpu.memory_space<vmem>>, vector<1x16x128xbf16>
    %373 = vector.shape_cast %372 : vector<1x16x128xbf16> to vector<16x128xbf16>
    %374 = arith.mulf %373, %7 : vector<16x128xbf16>
    %c30_249 = arith.constant 30 : index
    %c0_250 = arith.constant 0 : index
    %c0_251 = arith.constant 0 : index
    %375 = vector.load %arg3[%c30_249, %c0_250, %c0_251] : memref<32x16x128xbf16, #tpu.memory_space<vmem>>, vector<1x16x128xbf16>
    %376 = vector.shape_cast %375 : vector<1x16x128xbf16> to vector<16x128xbf16>
    %377 = arith.addf %374, %376 : vector<16x128xbf16>
    %378 = math.tanh %377 : vector<16x128xbf16>
    %c30_252 = arith.constant 30 : index
    %c0_253 = arith.constant 0 : index
    %c0_254 = arith.constant 0 : index
    %379 = vector.load %arg4[%c30_252, %c0_253, %c0_254] : memref<32x16x128xbf16, #tpu.memory_space<vmem>>, vector<1x16x128xbf16>
    %380 = vector.shape_cast %379 : vector<1x16x128xbf16> to vector<16x128xbf16>
    %381 = arith.mulf %378, %380 : vector<16x128xbf16>
    %382 = arith.extf %381 : vector<16x128xbf16> to vector<16x128xf32>
    %383 = arith.addf %335, %382 : vector<16x128xf32>
    %c31 = arith.constant 31 : index
    %c0_255 = arith.constant 0 : index
    %c0_256 = arith.constant 0 : index
    %384 = vector.load %arg2[%c31, %c0_255, %c0_256] : memref<32x16x128xbf16, #tpu.memory_space<vmem>>, vector<1x16x128xbf16>
    %385 = vector.shape_cast %384 : vector<1x16x128xbf16> to vector<16x128xbf16>
    %386 = arith.mulf %385, %7 : vector<16x128xbf16>
    %c31_257 = arith.constant 31 : index
    %c0_258 = arith.constant 0 : index
    %c0_259 = arith.constant 0 : index
    %387 = vector.load %arg3[%c31_257, %c0_258, %c0_259] : memref<32x16x128xbf16, #tpu.memory_space<vmem>>, vector<1x16x128xbf16>
    %388 = vector.shape_cast %387 : vector<1x16x128xbf16> to vector<16x128xbf16>
    %389 = arith.addf %386, %388 : vector<16x128xbf16>
    %390 = math.tanh %389 : vector<16x128xbf16>
    %c31_260 = arith.constant 31 : index
    %c0_261 = arith.constant 0 : index
    %c0_262 = arith.constant 0 : index
    %391 = vector.load %arg4[%c31_260, %c0_261, %c0_262] : memref<32x16x128xbf16, #tpu.memory_space<vmem>>, vector<1x16x128xbf16>
    %392 = vector.shape_cast %391 : vector<1x16x128xbf16> to vector<16x128xbf16>
    %393 = arith.mulf %390, %392 : vector<16x128xbf16>
    %394 = arith.extf %393 : vector<16x128xbf16> to vector<16x128xf32>
    %395 = arith.addf %347, %394 : vector<16x128xf32>
    %396 = arith.addf %359, %371 : vector<16x128xf32>
    %397 = arith.addf %396, %383 : vector<16x128xf32>
    %398 = arith.addf %397, %395 : vector<16x128xf32>
    %399 = vector.broadcast %0 : f32 to vector<16x128xf32>
    %400 = arith.addf %398, %399 : vector<16x128xf32>
    %401 = arith.index_cast %4 : i32 to index
    %c0_263 = arith.constant 0 : index
    %402 = vector.load %arg6[%401, %c0_263] : memref<16x128xf32, #tpu.memory_space<vmem>>, vector<16x128xf32>
    tpu.vector_store %arg6[%401, %c0_263], %400 {strides = array<i32>} : memref<16x128xf32, #tpu.memory_space<vmem>>, vector<16x128xf32>,
    %c1_i32_264 = arith.constant 1 : i32
    return
  }
  func.func @transform_0(%arg0: i32) -> (i32, i32) {
    %c0_i32 = arith.constant 0 : i32
    %c0_i32_0 = arith.constant 0 : i32
    return %arg0, %c0_i32 : i32, i32
  }
  func.func @transform_1(%arg0: i32) -> (i32, i32, i32) {
    %c0_i32 = arith.constant 0 : i32
    %c0_i32_0 = arith.constant 0 : i32
    %c0_i32_1 = arith.constant 0 : i32
    %c0_i32_2 = arith.constant 0 : i32
    return %c0_i32, %c0_i32_0, %c0_i32_1 : i32, i32, i32
  }
  func.func @transform_2(%arg0: i32) -> (i32, i32, i32) {
    %c0_i32 = arith.constant 0 : i32
    %c0_i32_0 = arith.constant 0 : i32
    %c0_i32_1 = arith.constant 0 : i32
    %c0_i32_2 = arith.constant 0 : i32
    return %c0_i32, %c0_i32_0, %c0_i32_1 : i32, i32, i32
  }
  func.func @transform_3(%arg0: i32) -> (i32, i32, i32) {
    %c0_i32 = arith.constant 0 : i32
    %c0_i32_0 = arith.constant 0 : i32
    %c0_i32_1 = arith.constant 0 : i32
    %c0_i32_2 = arith.constant 0 : i32
    return %c0_i32, %c0_i32_0, %c0_i32_1 : i32, i32, i32
  }
  func.func @transform_4(%arg0: i32) -> (i32, i32) {
    %c0_i32 = arith.constant 0 : i32
    %c0_i32_0 = arith.constant 0 : i32
    %c0_i32_1 = arith.constant 0 : i32
    return %c0_i32, %c0_i32_0 : i32, i32
  }
  func.func @transform_5(%arg0: i32) -> (i32, i32) {
    %c0_i32 = arith.constant 0 : i32
    %c0_i32_0 = arith.constant 0 : i32
    return %arg0, %c0_i32 : i32, i32
  }
}

</mosaic_0001>

<bundles_post_ra>
// kernel: tpu_custom_call.1
= control target key start
LH: loop header
LB: loop body
LE: loop exit
PB: predicated region body
PF: predicated region fallthrough
CT: control target
= control target key end

     0   :  { %11 = vsyncpa [#allocation4], 0  ;;  %s1376_s0 = inlined_call_operand.hbm [shape: f32[16,128], index: 0, kind: input, shape index: {}]   ;;  %s1377_s1 = inlined_call_operand.hbm [shape: bf16[32,16,128], index: 1, kind: input, shape index: {}]   ;;  %s1378_s2 = inlined_call_operand.hbm [shape: bf16[32,16,128], index: 2, kind: input, shape index: {}]   ;;  %s1379_s3 = inlined_call_operand.hbm [shape: bf16[32,16,128], index: 3, kind: input, shape index: {}]   ;;  %s1380_s4 = inlined_call_operand.<no memory space> [shape: f32[1,1], index: 4, kind: input, shape index: {}]   ;;  %s1381_s5 = inlined_call_operand.hbm [shape: f32[16,128], index: 5, kind: output, shape index: {}]  }
   0x1   :  { %12 = vsyncpa [#allocation7], 0 }
   0x2   :  { %13 = vsyncpa [#allocation10], 0 }
   0x3   :  { %14 = vsyncpa [#allocation5], 0  ;;  %s1046_s18 = smov [#allocation6]   ;;  %s928_s22 = scalar_lea.hbm %s1377_s1, 4096 }
   0x4   :  { %s32_s19 = sshll.u32 %s1046_s18, 4  ;;  %p929_p0 = scmp.ne.s32.totalorder %s1377_s1, %s928_s22  ;;  %s33_s19 = int_to_ptr.vmem [resolvable:$true] %s32_s19 }
   0x5   :  { %p932_p1 = scmp.lt.u32.totalorder %s928_s22, %s1377_s1 }
   0x7   :  { %p934_p2 = pnand %p932_p1, %p929_p0 }
   0x9   :  { %937 = shalt.err (!%p934_p2)
}
   0xa   :  { %s938_s27 = scalar_lea.vmem %s33_s19, 4096  ;;  %p943_p4 = scmp.lt.s32.totalorder %s33_s19, %s33_s19 }
   0xb   :  { %p939_p3 = scmp.ne.s32.totalorder %s33_s19, %s938_s27  ;;  %p944_p5 = scmp.lt.s32.totalorder %s938_s27, %s938_s27 }
   0xd   :  { %p945_p6 = por %p944_p5, %p943_p4 }
   0xf   :  { %p946_p7 = pnand %p945_p6, %p939_p3 }
  0x11   :  { %949 = shalt.err (!%p946_p7)
}
  0x12   :  { %s1047_s28 = smov 64   ;;  %s1048_s29 = smov 4  }
  0x13   :  { %38 = dma.hbm_to_vmem [thread:$0]  %s1377_s1, 4096, %s33_s19, [#allocation7], %s1047_s28, %s1047_s28, %s1048_s29  }
  0x14   :  { %s1049_s7 = smov [#allocation3]   ;;  %s950_s11 = scalar_lea.hbm %s1376_s0, 256 }
  0x15   :  { %s20_s8 = sshll.u32 %s1049_s7, 4  ;;  %p951_p8 = scmp.ne.s32.totalorder %s1376_s0, %s950_s11  ;;  %s21_s8 = int_to_ptr.vmem [resolvable:$true] %s20_s8 }
  0x16   :  { %p954_p9 = scmp.lt.u32.totalorder %s950_s11, %s1376_s0 }
  0x18   :  { %p956_p10 = pnand %p954_p9, %p951_p8 }
  0x1a   :  { %959 = shalt.err (!%p956_p10)
}
  0x1b   :  { %s960_s16 = scalar_lea.vmem %s21_s8, 256  ;;  %p965_p12 = scmp.lt.s32.totalorder %s21_s8, %s21_s8 }
  0x1c   :  { %p961_p11 = scmp.ne.s32.totalorder %s21_s8, %s960_s16  ;;  %p966_p13 = scmp.lt.s32.totalorder %s960_s16, %s960_s16 }
  0x1e   :  { %p967_p0 = por %p966_p13, %p965_p12 }
  0x20   :  { %p968_p1 = pnand %p967_p0, %p961_p11 }
  0x22   :  { %971 = shalt.err (!%p968_p1)
}
  0x23   :  { %s1050_s1 = smov 128   ;;  %s1051_s17 = smov 8  }
  0x24   :  { %26 = dma.hbm_to_vmem [thread:$0]  %s1376_s0, 256, %s21_s8, [#allocation4], %s1050_s1, %s1050_s1, %s1051_s17  }
  0x25   :  { %s1052_s20 = smov [#allocation8]   ;;  %s1053_s22 = smov [#allocation9]  }
  0x26   :  { %s44_s21 = sshll.u32 %s1052_s20, 4  ;;  %s56_s23 = sshll.u32 %s1053_s22, 4  ;;  %s45_s21 = int_to_ptr.vmem [resolvable:$true] %s44_s21  ;;  %s1115_s23 = int_to_ptr.vmem [resolvable:$true] %s56_s23 }
  0x27   :  { %s972_s26 = scalar_lea.hbm %s1378_s2, 4096 }
  0x28   :  { %p973_p2 = scmp.ne.s32.totalorder %s1378_s2, %s972_s26  ;;  %p976_p3 = scmp.lt.u32.totalorder %s972_s26, %s1378_s2 }
  0x2a   :  { %p978_p4 = pnand %p976_p3, %p973_p2 }
  0x2c   :  { %981 = shalt.err (!%p978_p4)
}
  0x2d   :  { %s982_s0 = scalar_lea.vmem %s45_s21, 4096  ;;  %p987_p6 = scmp.lt.s32.totalorder %s45_s21, %s45_s21 }
  0x2e   :  { %p983_p5 = scmp.ne.s32.totalorder %s45_s21, %s982_s0  ;;  %p988_p7 = scmp.lt.s32.totalorder %s982_s0, %s982_s0 }
  0x30   :  { %p989_p8 = por %p988_p7, %p987_p6 }
  0x32   :  { %p990_p9 = pnand %p989_p8, %p983_p5 }
  0x34   :  { %993 = shalt.err (!%p990_p9)
}
  0x35   :  { %50 = dma.hbm_to_vmem [thread:$0]  %s1378_s2, 4096, %s45_s21, [#allocation7], %s1047_s28, %s1047_s28, %s1048_s29  }
  0x36   :  { %s994_s12 = scalar_lea.hbm %s1379_s3, 4096 }
  0x37   :  { %p995_p10 = scmp.ne.s32.totalorder %s1379_s3, %s994_s12  ;;  %p998_p11 = scmp.lt.u32.totalorder %s994_s12, %s1379_s3 }
  0x39   :  { %p1000_p12 = pnand %p998_p11, %p995_p10 }
  0x3b   :  { %1003 = shalt.err (!%p1000_p12)
}
  0x3c   :  { %s1004_s18 = scalar_lea.vmem %s1115_s23, 4096  ;;  %p1009_p0 = scmp.lt.s32.totalorder %s1115_s23, %s1115_s23 }
  0x3d   :  { %p1005_p13 = scmp.ne.s32.totalorder %s1115_s23, %s1004_s18  ;;  %p1010_p1 = scmp.lt.s32.totalorder %s1004_s18, %s1004_s18 }
  0x3f   :  { %p1011_p2 = por %p1010_p1, %p1009_p0 }
  0x41   :  { %p1012_p3 = pnand %p1011_p2, %p1005_p13 }
  0x43   :  { %1015 = shalt.err (!%p1012_p3)
}
  0x44   :  { %62 = dma.hbm_to_vmem [thread:$0]  %s1379_s3, 4096, %s1115_s23, [#allocation10], %s1047_s28, %s1047_s28, %s1048_s29  }
  0x45   :  { %1038 = dma.done.wait [#allocation4], 256  }
  0x46   :  { %1039 = vsyncadd [#allocation4], 4294967040 }
  0x47   :  { %1040 = dma.done.wait [#allocation7], 8192  }
  0x48   :  { %1041 = vsyncadd [#allocation7], 4294959104 }
  0x49   :  { %1042 = dma.done.wait [#allocation10], 4096  }
  0x4a   :  { %1043 = vsyncadd [#allocation10], 4294963200  ;;  %v78_v0 = vld [vmem:[#allocation3] sm:$0xff]  ;;  %v79_v1 = vld [vmem:[#allocation3 + $0x8] sm:$0xff]  ;;  %s1054_s29 = smov [#allocation11]  }
  0x4b   :  { %v81_v2 = vld [vmem:[#allocation6] sm:$0xf]  ;;  %v82_v3 = vld [vmem:[#allocation6 + $0x4] sm:$0xf]  ;;  %v1152_v4 = vpack.c.bf16 %v78_v0, %v78_v0  ;;  %v1154_v5 = vpack.c.bf16 %v79_v1, %v79_v1  ;;  %v107_v6 = vld [vmem:[#allocation6 + $0x8] sm:$0xf] }
  0x4c   :  { %v92_v9 = vld [vmem:[#allocation8] sm:$0xf]  ;;  %v108_v10 = vld [vmem:[#allocation6 + $0xc] sm:$0xf]  ;;  %v93_v11 = vld [vmem:[#allocation8 + $0x4] sm:$0xf] }
  0x4d   :  { %v90_v7 = vmul.bf16 %v1152_v4, %v81_v2  ;;  %v91_v8 = vmul.bf16 %v1154_v5, %v82_v3  ;;  %v109_v12 = vmul.bf16 %v1152_v4, %v107_v6  ;;  %v128_v13 = vld [vmem:[#allocation6 + $0x10] sm:$0xf]  ;;  %v110_v14 = vmul.bf16 %v1154_v5, %v108_v10  ;;  %v112_v15 = vld [vmem:[#allocation8 + $0x8] sm:$0xf]  ;;  %v129_v16 = vld [vmem:[#allocation6 + $0x14] sm:$0xf] }
  0x4e   :  { %v113_v18 = vld [vmem:[#allocation8 + $0xc] sm:$0xf]  ;;  %v130_v19 = vmul.bf16 %v1152_v4, %v128_v13  ;;  %v131_v21 = vmul.bf16 %v1154_v5, %v129_v16  ;;  %v133_v22 = vld [vmem:[#allocation8 + $0x10] sm:$0xf]  ;;  %v134_v24 = vld [vmem:[#allocation8 + $0x14] sm:$0xf] }
  0x4f   :  { %v94_v17 = vadd.bf16 %v92_v9, %v90_v7  ;;  %v95_v20 = vadd.bf16 %v93_v11, %v91_v8  ;;  %v114_v23 = vadd.bf16 %v112_v15, %v109_v12  ;;  %v149_v25 = vld [vmem:[#allocation6 + $0x18] sm:$0xf]  ;;  %v170_v26 = vld [vmem:[#allocation6 + $0x20] sm:$0xf]  ;;  %v115_v27 = vadd.bf16 %v113_v18, %v110_v14  ;;  %v150_v28 = vld [vmem:[#allocation6 + $0x1c] sm:$0xf] }
  0x50   :  { %v171_v29 = vld [vmem:[#allocation6 + $0x24] sm:$0xf]  ;;  %v172_v30 = vmul.bf16 %v1152_v4, %v170_v26  ;;  %v175_v31 = vld [vmem:[#allocation8 + $0x20] sm:$0xf]  ;;  %v135_v32 = vadd.bf16 %v133_v22, %v130_v19  ;;  %v191_v35 = vld [vmem:[#allocation6 + $0x28] sm:$0xf]  ;;  %v136_v36 = vadd.bf16 %v134_v24, %v131_v21  ;;  %v151_v37 = vmul.bf16 %v1152_v4, %v149_v25 }
  0x51   :  { %800 = vtanh.bf16 %v94_v17  ;;  %v173_v33 = vmul.bf16 %v1154_v5, %v171_v29  ;;  %v176_v34 = vld [vmem:[#allocation8 + $0x24] sm:$0xf]  ;;  %v192_v38 = vld [vmem:[#allocation6 + $0x2c] sm:$0xf]  ;;  %v193_v39 = vmul.bf16 %v1152_v4, %v191_v35  ;;  %v196_v40 = vld [vmem:[#allocation8 + $0x28] sm:$0xf]  ;;  %v152_v41 = vmul.bf16 %v1154_v5, %v150_v28 }
  0x52   :  { %802 = vtanh.bf16 %v95_v20  ;;  %v154_v42 = vld [vmem:[#allocation8 + $0x18] sm:$0xf]  ;;  %v177_v43 = vadd.bf16 %v175_v31, %v172_v30  ;;  %v212_v44 = vld [vmem:[#allocation6 + $0x30] sm:$0xf]  ;;  %v155_v45 = vld [vmem:[#allocation8 + $0x1c] sm:$0xf]  ;;  %v194_v47 = vmul.bf16 %v1154_v5, %v192_v38 }
  0x53   :  { %804 = vtanh.bf16 %v114_v23  ;;  %v178_v46 = vadd.bf16 %v176_v34, %v173_v33  ;;  %v213_v48 = vld [vmem:[#allocation6 + $0x34] sm:$0xf]  ;;  %v197_v49 = vld [vmem:[#allocation8 + $0x2c] sm:$0xf]  ;;  %v198_v50 = vadd.bf16 %v196_v40, %v193_v39  ;;  %v214_v51 = vmul.bf16 %v1152_v4, %v212_v44  ;;  %v233_v52 = vld [vmem:[#allocation6 + $0x38] sm:$0xf] }
  0x54   :  { %806 = vtanh.bf16 %v115_v27  ;;  %v156_v53 = vadd.bf16 %v154_v42, %v151_v37  ;;  %v215_v54 = vmul.bf16 %v1154_v5, %v213_v48  ;;  %v217_v55 = vld [vmem:[#allocation8 + $0x30] sm:$0xf]  ;;  %v157_v56 = vadd.bf16 %v155_v45, %v152_v41  ;;  %v218_v57 = vld [vmem:[#allocation8 + $0x34] sm:$0xf]  ;;  %v234_v60 = vld [vmem:[#allocation6 + $0x3c] sm:$0xf] }
  0x55   :  { %808 = vtanh.bf16 %v135_v32  ;;  %v235_v58 = vmul.bf16 %v1152_v4, %v233_v52  ;;  %v199_v59 = vadd.bf16 %v197_v49, %v194_v47  ;;  %v238_v61 = vld [vmem:[#allocation8 + $0x38] sm:$0xf]  ;;  %v219_v62 = vadd.bf16 %v217_v55, %v214_v51  ;;  %v254_v63 = vld [vmem:[#allocation6 + $0x40] sm:$0xf]  ;;  %v255_v1 = vld [vmem:[#allocation6 + $0x44] sm:$0xf] }
  0x56   :  { %810 = vtanh.bf16 %v136_v36  ;;  %v220_v0 = vadd.bf16 %v218_v57, %v215_v54  ;;  %v236_v2 = vmul.bf16 %v1154_v5, %v234_v60  ;;  %v98_v7 = vld [vmem:[#allocation9] sm:$0xf]  ;;  %v239_v8 = vld [vmem:[#allocation8 + $0x3c] sm:$0xf]  ;;  %v256_v9 = vmul.bf16 %v1152_v4, %v254_v63  ;;  %v275_v10 = vld [vmem:[#allocation6 + $0x48] sm:$0xf] }
  0x57   :  { %812 = vtanh.bf16 %v177_v43  ;;  %v240_v3 = vadd.bf16 %v238_v61, %v235_v58  ;;  %v257_v12 = vmul.bf16 %v1154_v5, %v255_v1  ;;  %v259_v13 = vld [vmem:[#allocation8 + $0x40] sm:$0xf]  ;;  %v276_v14 = vld [vmem:[#allocation6 + $0x4c] sm:$0xf]  ;;  %v260_v16 = vld [vmem:[#allocation8 + $0x44] sm:$0xf]  ;;  %v277_v23 = vmul.bf16 %v1152_v4, %v275_v10 }
  0x58   :  { %814 = vtanh.bf16 %v178_v46  ;;  %v296_v17 = vld [vmem:[#allocation6 + $0x50] sm:$0xf]  ;;  %v99_v19 = vld [vmem:[#allocation9 + $0x4] sm:$0xf]  ;;  %v119_v21 = vld [vmem:[#allocation9 + $0x8] sm:$0xf]  ;;  %v241_v22 = vadd.bf16 %v239_v8, %v236_v2  ;;  %v261_v26 = vadd.bf16 %v259_v13, %v256_v9  ;;  %v278_v27 = vmul.bf16 %v1154_v5, %v276_v14 }
  0x59   :  { %816 = vtanh.bf16 %v198_v50  ;;  %v297_v24 = vld [vmem:[#allocation6 + $0x54] sm:$0xf]  ;;  %v280_v28 = vld [vmem:[#allocation8 + $0x48] sm:$0xf]  ;;  %v317_v29 = vld [vmem:[#allocation6 + $0x58] sm:$0xf]  ;;  %v262_v32 = vadd.bf16 %v260_v16, %v257_v12  ;;  %v298_v34 = vmul.bf16 %v1152_v4, %v296_v17 }
  0x5a   :  { %818 = vtanh.bf16 %v156_v53  ;;  %v120_v31 = vld [vmem:[#allocation9 + $0xc] sm:$0xf]  ;;  %v318_v35 = vld [vmem:[#allocation6 + $0x5c] sm:$0xf]  ;;  %v140_v39 = vld [vmem:[#allocation9 + $0x10] sm:$0xf]  ;;  %v299_v40 = vmul.bf16 %v1154_v5, %v297_v24  ;;  %v282_v46 = vadd.bf16 %v280_v28, %v277_v23  ;;  %v319_v48 = vmul.bf16 %v1152_v4, %v317_v29 }
  0x5b   :  { %820 = vtanh.bf16 %v157_v56  ;;  %v281_v33 = vld [vmem:[#allocation8 + $0x4c] sm:$0xf]  ;;  %v301_v41 = vld [vmem:[#allocation8 + $0x50] sm:$0xf]  ;;  %v338_v42 = vld [vmem:[#allocation6 + $0x60] sm:$0xf]  ;;  %v320_v54 = vmul.bf16 %v1154_v5, %v318_v35 }
  0x5c   :  { %v801_v6 = vpop.eup %800  ;;  %822 = vtanh.bf16 %v199_v59  ;;  %v182_v45 = vld [vmem:[#allocation9 + $0x20] sm:$0xf]  ;;  %v302_v47 = vld [vmem:[#allocation8 + $0x54] sm:$0xf]  ;;  %v183_v51 = vld [vmem:[#allocation9 + $0x24] sm:$0xf]  ;;  %v283_v53 = vadd.bf16 %v281_v33, %v278_v27  ;;  %v303_v58 = vadd.bf16 %v301_v41, %v298_v34  ;;  %v340_v61 = vmul.bf16 %v1152_v4, %v338_v42 }
  0x5d   :  { %v803_v11 = vpop.eup %802  ;;  %824 = vtanh.bf16 %v219_v62  ;;  %v100_v20 = vmul.bf16 %v801_v6, %v98_v7  ;;  %v203_v52 = vld [vmem:[#allocation9 + $0x28] sm:$0xf]  ;;  %v322_v55 = vld [vmem:[#allocation8 + $0x58] sm:$0xf]  ;;  %v323_v59 = vld [vmem:[#allocation8 + $0x5c] sm:$0xf] }
  0x5e   :  { %v805_v15 = vpop.eup %804  ;;  %826 = vtanh.bf16 %v220_v0  ;;  %v101_v37 = vmul.bf16 %v803_v11, %v99_v19  ;;  %v339_v60 = vld [vmem:[#allocation6 + $0x64] sm:$0xf]  ;;  %v141_v1 = vld [vmem:[#allocation9 + $0x14] sm:$0xf]  ;;  %v343_v6 = vld [vmem:[#allocation8 + $0x60] sm:$0xf]  ;;  %v324_v12 = vadd.bf16 %v322_v55, %v319_v48  ;;  %v325_v16 = vadd.bf16 %v323_v59, %v320_v54 }
  0x5f   :  { %v1174_v18 = vpop.eup %806  ;;  %828 = vtanh.bf16 %v240_v3  ;;  %v121_v38 = vmul.bf16 %v805_v15, %v119_v21  ;;  %v1182_v44 = vunpack.c.l.bf16 %v100_v20  ;;  %v304_v3 = vadd.bf16 %v302_v47, %v299_v40  ;;  %v161_v8 = vld [vmem:[#allocation9 + $0x18] sm:$0xf]  ;;  %v162_v9 = vld [vmem:[#allocation9 + $0x1c] sm:$0xf]  ;;  %v204_v15 = vld [vmem:[#allocation9 + $0x2c] sm:$0xf] }
  0x60   :  { %v809_v25 = vpop.eup %808  ;;  %830 = vtanh.bf16 %v241_v22  ;;  %v122_v50 = vmul.bf16 %v1174_v18, %v120_v31  ;;  %v103_v63 = vunpack.c.l.bf16 %v101_v37  ;;  %v341_v17 = vmul.bf16 %v1154_v5, %v339_v60  ;;  %v224_v21 = vld [vmem:[#allocation9 + $0x30] sm:$0xf]  ;;  %v344_v22 = vld [vmem:[#allocation8 + $0x64] sm:$0xf]  ;;  %v359_v24 = vld [vmem:[#allocation6 + $0x68] sm:$0xf] }
  0x61   :  { %v1178_v30 = vpop.eup %810  ;;  %832 = vtanh.bf16 %v261_v26  ;;  %v142_v57 = vmul.bf16 %v809_v25, %v140_v39  ;;  %v1188_v0 = vunpack.c.l.bf16 %v121_v38  ;;  %v345_v23 = vadd.bf16 %v343_v6, %v340_v61  ;;  %v225_v29 = vld [vmem:[#allocation9 + $0x34] sm:$0xf]  ;;  %v245_v31 = vld [vmem:[#allocation9 + $0x38] sm:$0xf]  ;;  %v365_v39 = vld [vmem:[#allocation8 + $0x6c] sm:$0xf] }
  0x62   :  { %v813_v36 = vpop.eup %812  ;;  %834 = vtanh.bf16 %v262_v32  ;;  %v1190_v14 = vunpack.c.l.bf16 %v122_v50  ;;  %v143_v19 = vmul.bf16 %v1178_v30, %v141_v1  ;;  %v360_v32 = vld [vmem:[#allocation6 + $0x6c] sm:$0xf]  ;;  %v364_v30 = vld [vmem:[#allocation8 + $0x68] sm:$0xf]  ;;  %v346_v37 = vadd.bf16 %v344_v22, %v341_v17  ;;  %v401_v59 = vld [vmem:[#allocation6 + $0x78] sm:$0xf] }
  0x63   :  { %v815_v43 = vpop.eup %814  ;;  %v184_v2 = vmul.bf16 %v813_v36, %v182_v45  ;;  %836 = vtanh.bf16 %v282_v46  ;;  %v1194_v20 = vunpack.c.l.bf16 %v142_v57  ;;  %v361_v38 = vmul.bf16 %v1152_v4, %v359_v24  ;;  %v267_v1 = vld [vmem:[#allocation9 + $0x44] sm:$0xf]  ;;  %v402_v6 = vld [vmem:[#allocation6 + $0x7c] sm:$0xf]  ;;  %s773_s20 = sshll.u32 %s1054_s29, 4  ;;  %s774_s20 = int_to_ptr.vmem [resolvable:$true] %s773_s20 }
  0x64   :  { %v817_v49 = vpop.eup %816  ;;  %v185_v10 = vmul.bf16 %v815_v43, %v183_v51  ;;  %838 = vtanh.bf16 %v283_v53  ;;  %v362_v42 = vmul.bf16 %v1154_v5, %v360_v32  ;;  %v380_v43 = vld [vmem:[#allocation6 + $0x70] sm:$0xf]  ;;  %v145_v46 = vunpack.c.l.bf16 %v143_v19  ;;  %v381_v51 = vld [vmem:[#allocation6 + $0x74] sm:$0xf]  ;;  %v287_v19 = vld [vmem:[#allocation9 + $0x48] sm:$0xf]  ;;  %p1021_p5 = scmp.lt.s32.totalorder %s774_s20, %s774_s20 }
  0x65   :  { %v819_v56 = vpop.eup %818  ;;  %v205_v11 = vmul.bf16 %v817_v49, %v203_v52  ;;  %840 = vtanh.bf16 %v303_v58  ;;  %v186_v28 = vunpack.c.l.bf16 %v184_v2  ;;  %v246_v49 = vld [vmem:[#allocation9 + $0x3c] sm:$0xf]  ;;  %v366_v50 = vadd.bf16 %v364_v30, %v361_v38  ;;  %v385_v58 = vld [vmem:[#allocation8 + $0x70] sm:$0xf]  ;;  %v288_v32 = vld [vmem:[#allocation9 + $0x4c] sm:$0xf] }
  0x66   :  { %v821_v62 = vpop.eup %820  ;;  %v163_v26 = vmul.bf16 %v819_v56, %v161_v8  ;;  %842 = vtanh.bf16 %v304_v3  ;;  %v187_v33 = vunpack.c.l.bf16 %v185_v10  ;;  %v266_v56 = vld [vmem:[#allocation9 + $0x40] sm:$0xf]  ;;  %v367_v57 = vadd.bf16 %v365_v39, %v362_v42  ;;  %v386_v3 = vld [vmem:[#allocation8 + $0x74] sm:$0xf]  ;;  %v443_v30 = vld [vmem:[#allocation6 + $0x88] sm:$0xf] }
  0x67   :  { %v823_v7 = vpop.eup %822  ;;  %v164_v27 = vmul.bf16 %v821_v62, %v162_v9  ;;  %v207_v35 = vunpack.c.l.bf16 %v205_v11  ;;  %844 = vtanh.bf16 %v324_v12  ;;  %v1203_v53 = vadd.f32 %v186_v28, %v1182_v44  ;;  %v406_v9 = vld [vmem:[#allocation8 + $0x78] sm:$0xf]  ;;  %v422_v10 = vld [vmem:[#allocation6 + $0x80] sm:$0xf]  ;;  %v309_v38 = vld [vmem:[#allocation9 + $0x54] sm:$0xf] }
  0x68   :  { %v825_v13 = vpop.eup %824  ;;  %v206_v34 = vmul.bf16 %v823_v7, %v204_v15  ;;  %846 = vtanh.bf16 %v325_v16  ;;  %v1198_v47 = vunpack.c.l.bf16 %v163_v26  ;;  %v1205_v54 = vadd.f32 %v187_v33, %v103_v63  ;;  %v407_v15 = vld [vmem:[#allocation8 + $0x7c] sm:$0xf]  ;;  %v423_v16 = vld [vmem:[#allocation6 + $0x84] sm:$0xf]  ;;  %v308_v33 = vld [vmem:[#allocation9 + $0x50] sm:$0xf] }
  0x69   :  { %v827_v18 = vpop.eup %826  ;;  %v226_v36 = vmul.bf16 %v825_v13, %v224_v21  ;;  %848 = vtanh.bf16 %v345_v23  ;;  %v1200_v48 = vunpack.c.l.bf16 %v164_v27  ;;  %v1208_v61 = vadd.f32 %v207_v35, %v1188_v0  ;;  %v427_v23 = vld [vmem:[#allocation8 + $0x80] sm:$0xf]  ;;  %v329_v39 = vld [vmem:[#allocation9 + $0x58] sm:$0xf]  ;;  %s1016_s21 = scalar_lea.vmem %s774_s20, 256 }
  0x6a   :  { %v829_v25 = vpop.eup %828  ;;  %v227_v40 = vmul.bf16 %v827_v18, %v225_v29  ;;  %v208_v55 = vunpack.c.l.bf16 %v206_v34  ;;  %850 = vtanh.bf16 %v346_v37  ;;  %v382_v2 = vmul.bf16 %v1152_v4, %v380_v43  ;;  %p1017_p4 = scmp.ne.s32.totalorder %s774_s20, %s1016_s21  ;;  %p1022_p6 = scmp.lt.s32.totalorder %s1016_s21, %s1016_s21 }
  0x6b   :  { %v247_v41 = vmul.bf16 %v829_v25, %v245_v31  ;;  %v831_v45 = vpop.eup %830  ;;  %v228_v62 = vunpack.c.l.bf16 %v226_v36  ;;  %v383_v8 = vmul.bf16 %v1154_v5, %v381_v51  ;;  %852 = vtanh.bf16 %v366_v50 }
  0x6c   :  { %v833_v52 = vpop.eup %832  ;;  %v229_v44 = vunpack.c.l.bf16 %v227_v40  ;;  %v248_v7 = vmul.bf16 %v831_v45, %v246_v49  ;;  %v387_v13 = vadd.bf16 %v385_v58, %v382_v2  ;;  %v403_v0 = vmul.bf16 %v1152_v4, %v401_v59  ;;  %v444_v49 = vld [vmem:[#allocation6 + $0x8c] sm:$0xf]  ;;  %v464_v58 = vld [vmem:[#allocation6 + $0x90] sm:$0xf]  ;;  %p1023_p7 = por %p1022_p6, %p1021_p5 }
  0x6d   :  { %v835_v60 = vpop.eup %834  ;;  %v249_v63 = vunpack.c.l.bf16 %v247_v41  ;;  %v268_v12 = vmul.bf16 %v833_v52, %v266_v56  ;;  %854 = vtanh.bf16 %v367_v57  ;;  %v388_v21 = vadd.bf16 %v386_v3, %v383_v8  ;;  %v448_v57 = vld [vmem:[#allocation8 + $0x88] sm:$0xf]  ;;  %v351_v8 = vld [vmem:[#allocation9 + $0x64] sm:$0xf] }
  0x6e   :  { %v837_v11 = vpop.eup %836  ;;  %v269_v18 = vmul.bf16 %v835_v60, %v267_v1  ;;  %v404_v22 = vmul.bf16 %v1154_v5, %v402_v6  ;;  %v1215_v25 = vadd.f32 %v208_v55, %v1190_v14  ;;  %v1218_v26 = vadd.f32 %v228_v62, %v1194_v20  ;;  %v428_v20 = vld [vmem:[#allocation8 + $0x84] sm:$0xf]  ;;  %v350_v55 = vld [vmem:[#allocation9 + $0x60] sm:$0xf]  ;;  %p1024_p8 = pnand %p1023_p7, %p1017_p4 }
  0x6f   :  { %v839_v17 = vpop.eup %838  ;;  %v408_v27 = vadd.bf16 %v406_v9, %v403_v0  ;;  %v424_v28 = vmul.bf16 %v1152_v4, %v422_v10  ;;  %v1221_v31 = vadd.f32 %v229_v44, %v145_v46  ;;  %856 = vtanh.bf16 %v387_v13  ;;  %v330_v46 = vld [vmem:[#allocation9 + $0x5c] sm:$0xf]  ;;  %v485_v44 = vld [vmem:[#allocation6 + $0x98] sm:$0xf]  ;;  %v449_v10 = vld [vmem:[#allocation8 + $0x8c] sm:$0xf] }
  0x70   :  { %v841_v24 = vpop.eup %840  ;;  %v409_v34 = vadd.bf16 %v407_v15, %v404_v22  ;;  %v425_v35 = vmul.bf16 %v1154_v5, %v423_v16  ;;  %v250_v37 = vunpack.c.l.bf16 %v248_v7  ;;  %v289_v14 = vmul.bf16 %v837_v11, %v287_v19  ;;  %v469_v16 = vld [vmem:[#allocation8 + $0x90] sm:$0xf]  ;;  %v371_v22 = vld [vmem:[#allocation9 + $0x68] sm:$0xf] }
  0x71   :  { %v843_v29 = vpop.eup %842  ;;  %858 = vtanh.bf16 %v388_v21  ;;  %v429_v40 = vadd.bf16 %v427_v23, %v424_v28  ;;  %v1225_v42 = vadd.f32 %v249_v63, %v1198_v47  ;;  %v270_v43 = vunpack.c.l.bf16 %v268_v12  ;;  %v465_v47 = vld [vmem:[#allocation6 + $0x94] sm:$0xf] }
  0x72   :  { %v845_v36 = vpop.eup %844  ;;  %v271_v45 = vunpack.c.l.bf16 %v269_v18  ;;  %860 = vtanh.bf16 %v408_v27  ;;  %v290_v51 = vmul.bf16 %v839_v17, %v288_v32  ;;  %v310_v52 = vmul.bf16 %v841_v24, %v308_v33  ;;  %v486_v17 = vld [vmem:[#allocation6 + $0x9c] sm:$0xf]  ;;  %v490_v33 = vld [vmem:[#allocation8 + $0x98] sm:$0xf] }
  0x73   :  { %v847_v41 = vpop.eup %846  ;;  %862 = vtanh.bf16 %v409_v34  ;;  %v445_v56 = vmul.bf16 %v1152_v4, %v443_v30  ;;  %v311_v59 = vmul.bf16 %v843_v29, %v309_v38  ;;  %v331_v60 = vmul.bf16 %v845_v36, %v329_v39  ;;  %v372_v29 = vld [vmem:[#allocation9 + $0x6c] sm:$0xf]  ;;  %v506_v36 = vld [vmem:[#allocation6 + $0xa0] sm:$0xf] }
  0x74   :  { %v849_v50 = vpop.eup %848  ;;  %v430_v62 = vadd.bf16 %v428_v20, %v425_v35  ;;  %864 = vtanh.bf16 %v429_v40  ;;  %v252_v1 = vadd.f32 %v250_v37, %v1200_v48  ;;  %v291_v2 = vunpack.c.l.bf16 %v289_v14  ;;  %v491_v20 = vld [vmem:[#allocation8 + $0x9c] sm:$0xf]  ;;  %v507_v40 = vld [vmem:[#allocation6 + $0xa4] sm:$0xf] }
  0x75   :  { %v332_v3 = vmul.bf16 %v847_v41, %v330_v46  ;;  %v446_v6 = vmul.bf16 %v1154_v5, %v444_v49  ;;  %v851_v7 = vpop.eup %850  ;;  %v272_v63 = vadd.f32 %v270_v43, %v1203_v53  ;;  %v352_v9 = vmul.bf16 %v849_v50, %v350_v55  ;;  %v470_v53 = vld [vmem:[#allocation8 + $0x94] sm:$0xf]  ;;  %v392_v49 = vld [vmem:[#allocation9 + $0x70] sm:$0xf] }
  0x76   :  { %v450_v11 = vadd.bf16 %v448_v57, %v445_v56  ;;  %v466_v12 = vmul.bf16 %v1152_v4, %v464_v58  ;;  %v1233_v13 = vadd.f32 %v271_v45, %v1205_v54  ;;  %v292_v0 = vunpack.c.l.bf16 %v290_v51  ;;  %v853_v18 = vpop.eup %852  ;;  %v527_v51 = vld [vmem:[#allocation6 + $0xa8] sm:$0xf]  ;;  %v393_v55 = vld [vmem:[#allocation9 + $0x74] sm:$0xf]  ;;  %v528_v57 = vld [vmem:[#allocation6 + $0xac] sm:$0xf] }
  0x77   :  { %v312_v15 = vunpack.c.l.bf16 %v310_v52  ;;  %v467_v48 = vmul.bf16 %v1154_v5, %v465_v47  ;;  %v313_v19 = vunpack.c.l.bf16 %v311_v59  ;;  %v333_v21 = vunpack.c.l.bf16 %v331_v60  ;;  %v414_v60 = vld [vmem:[#allocation9 + $0x7c] sm:$0xf]  ;;  %v511_v47 = vld [vmem:[#allocation8 + $0xa0] sm:$0xf] }
  0x78   :  { %866 = vtanh.bf16 %v430_v62  ;;  %v487_v23 = vmul.bf16 %v1152_v4, %v485_v44  ;;  %v855_v24 = vpop.eup %854  ;;  %v1238_v27 = vadd.f32 %v291_v2, %v1208_v61  ;;  %v334_v54 = vunpack.c.l.bf16 %v332_v3  ;;  %v512_v44 = vld [vmem:[#allocation8 + $0xa4] sm:$0xf] }
  0x79   :  { %v353_v28 = vmul.bf16 %v851_v7, %v351_v8  ;;  %v451_v32 = vadd.bf16 %v449_v10, %v446_v6  ;;  %v354_v34 = vunpack.c.l.bf16 %v352_v9  ;;  %868 = vtanh.bf16 %v450_v11  ;;  %v434_v6 = vld [vmem:[#allocation9 + $0x80] sm:$0xf]  ;;  %v548_v8 = vld [vmem:[#allocation6 + $0xb0] sm:$0xf]  ;;  %v532_v11 = vld [vmem:[#allocation8 + $0xa8] sm:$0xf] }
  0x7a   :  { %v471_v35 = vadd.bf16 %v469_v16, %v466_v12  ;;  %v488_v30 = vmul.bf16 %v1154_v5, %v486_v17  ;;  %v857_v37 = vpop.eup %856  ;;  %v294_v14 = vadd.f32 %v292_v0, %v1215_v25  ;;  %v1243_v38 = vadd.f32 %v312_v15, %v1218_v26  ;;  %v549_v12 = vld [vmem:[#allocation6 + $0xb4] sm:$0xf]  ;;  %v533_v17 = vld [vmem:[#allocation8 + $0xac] sm:$0xf] }
  0x7b   :  { %v373_v39 = vmul.bf16 %v853_v18, %v371_v22  ;;  %v472_v61 = vadd.bf16 %v470_v53, %v467_v48  ;;  %v1246_v43 = vadd.f32 %v313_v19, %v1221_v31  ;;  %v1249_v45 = vadd.f32 %v333_v21, %v1225_v42  ;;  %v413_v31 = vld [vmem:[#allocation9 + $0x78] sm:$0xf]  ;;  %v570_v53 = vld [vmem:[#allocation6 + $0xbc] sm:$0xf] }
  0x7c   :  { %v859_v41 = vpop.eup %858  ;;  %v374_v46 = vmul.bf16 %v855_v24, %v372_v29  ;;  %v492_v50 = vadd.bf16 %v490_v33, %v487_v23  ;;  %v1251_v25 = vadd.f32 %v334_v54, %v252_v1  ;;  %v355_v26 = vunpack.c.l.bf16 %v353_v28  ;;  %v569_v18 = vld [vmem:[#allocation6 + $0xb8] sm:$0xf]  ;;  %v435_v28 = vld [vmem:[#allocation9 + $0x84] sm:$0xf]  ;;  %v590_v33 = vld [vmem:[#allocation6 + $0xc0] sm:$0xf] }
  0x7d   :  { %v861_v52 = vpop.eup %860  ;;  %870 = vtanh.bf16 %v451_v32  ;;  %v508_v56 = vmul.bf16 %v1152_v4, %v506_v36  ;;  %v1254_v59 = vadd.f32 %v354_v34, %v272_v63  ;;  %v493_v42 = vadd.bf16 %v491_v20, %v488_v30  ;;  %v553_v32 = vld [vmem:[#allocation8 + $0xb0] sm:$0xf]  ;;  %v554_v36 = vld [vmem:[#allocation8 + $0xb4] sm:$0xf] }
  0x7e   :  { %v863_v58 = vpop.eup %862  ;;  %872 = vtanh.bf16 %v471_v35  ;;  %v509_v62 = vmul.bf16 %v1154_v5, %v507_v40  ;;  %v375_v3 = vunpack.c.l.bf16 %v373_v39  ;;  %v394_v1 = vmul.bf16 %v857_v37, %v392_v49  ;;  %v591_v39 = vld [vmem:[#allocation6 + $0xc4] sm:$0xf] }
  0x7f   :  { %v865_v2 = vpop.eup %864  ;;  %874 = vtanh.bf16 %v472_v61  ;;  %v529_v7 = vmul.bf16 %v1152_v4, %v527_v51  ;;  %v376_v9 = vunpack.c.l.bf16 %v374_v46  ;;  %v395_v10 = vmul.bf16 %v859_v41, %v393_v55  ;;  %v574_v46 = vld [vmem:[#allocation8 + $0xb8] sm:$0xf] }
  0x80   :  { %876 = vtanh.bf16 %v492_v50  ;;  %v530_v63 = vmul.bf16 %v1154_v5, %v528_v57  ;;  %v1260_v0 = vadd.f32 %v355_v26, %v1233_v13  ;;  %v415_v15 = vmul.bf16 %v861_v52, %v413_v31  ;;  %v575_v52 = vld [vmem:[#allocation8 + $0xbc] sm:$0xf]  ;;  %v595_v57 = vld [vmem:[#allocation8 + $0xc0] sm:$0xf] }
  0x81   :  { %v416_v48 = vmul.bf16 %v863_v58, %v414_v60  ;;  %v513_v16 = vadd.bf16 %v511_v47, %v508_v56  ;;  %v436_v19 = vmul.bf16 %v865_v2, %v434_v6  ;;  %878 = vtanh.bf16 %v493_v42  ;;  %v456_v60 = vld [vmem:[#allocation9 + $0x8c] sm:$0xf]  ;;  %v596_v47 = vld [vmem:[#allocation8 + $0xc4] sm:$0xf]  ;;  %v611_v2 = vld [vmem:[#allocation6 + $0xc8] sm:$0xf] }
  0x82   :  { %v514_v21 = vadd.bf16 %v512_v44, %v509_v62  ;;  %v550_v22 = vmul.bf16 %v1152_v4, %v548_v8  ;;  %v1264_v24 = vadd.f32 %v375_v3, %v1238_v27  ;;  %v396_v54 = vunpack.c.l.bf16 %v394_v1  ;;  %v455_v27 = vld [vmem:[#allocation9 + $0x88] sm:$0xf]  ;;  %v476_v6 = vld [vmem:[#allocation9 + $0x90] sm:$0xf] }
  0x83   :  { %v867_v23 = vpop.eup %866  ;;  %v534_v29 = vadd.bf16 %v532_v11, %v529_v7  ;;  %v551_v13 = vmul.bf16 %v1154_v5, %v549_v12  ;;  %v1267_v34 = vadd.f32 %v376_v9, %v294_v14  ;;  %v397_v35 = vunpack.c.l.bf16 %v395_v10  ;;  %v612_v7 = vld [vmem:[#allocation6 + $0xcc] sm:$0xf]  ;;  %v477_v10 = vld [vmem:[#allocation9 + $0x94] sm:$0xf]  ;;  %v616_v11 = vld [vmem:[#allocation8 + $0xc8] sm:$0xf] }
  0x84   :  { %v535_v30 = vadd.bf16 %v533_v17, %v530_v63  ;;  %v571_v37 = vmul.bf16 %v1152_v4, %v569_v18  ;;  %v869_v61 = vpop.eup %868  ;;  %v417_v20 = vunpack.c.l.bf16 %v415_v15  ;;  %v418_v40 = vunpack.c.l.bf16 %v416_v48  ;;  %v632_v12 = vld [vmem:[#allocation6 + $0xd0] sm:$0xf]  ;;  %v497_v48 = vld [vmem:[#allocation9 + $0x98] sm:$0xf]  ;;  %v617_v17 = vld [vmem:[#allocation8 + $0xcc] sm:$0xf] }
  0x85   :  { %880 = vtanh.bf16 %v513_v16  ;;  %v572_v41 = vmul.bf16 %v1154_v5, %v570_v53  ;;  %v437_v49 = vmul.bf16 %v867_v23, %v435_v28  ;;  %v438_v50 = vunpack.c.l.bf16 %v436_v19  ;;  %v633_v18 = vld [vmem:[#allocation6 + $0xd4] sm:$0xf] }
  0x86   :  { %v555_v51 = vadd.bf16 %v553_v32, %v550_v22  ;;  %v592_v14 = vmul.bf16 %v1152_v4, %v590_v33  ;;  %v1273_v26 = vadd.f32 %v396_v54, %v1243_v38  ;;  %882 = vtanh.bf16 %v514_v21  ;;  %v637_v22 = vld [vmem:[#allocation8 + $0xd0] sm:$0xf]  ;;  %v498_v54 = vld [vmem:[#allocation9 + $0x9c] sm:$0xf] }
  0x87   :  { %v556_v55 = vadd.bf16 %v554_v36, %v551_v13  ;;  %v593_v56 = vmul.bf16 %v1154_v5, %v591_v39  ;;  %v1277_v31 = vadd.f32 %v397_v35, %v1246_v43  ;;  %v457_v42 = vmul.bf16 %v869_v61, %v455_v27  ;;  %v638_v13 = vld [vmem:[#allocation8 + $0xd4] sm:$0xf]  ;;  %v654_v36 = vld [vmem:[#allocation6 + $0xdc] sm:$0xf] }
  0x88   :  { %v871_v58 = vpop.eup %870  ;;  %884 = vtanh.bf16 %v534_v29  ;;  %v576_v62 = vadd.bf16 %v574_v46, %v571_v37  ;;  %v1280_v1 = vadd.f32 %v417_v20, %v1249_v45  ;;  %v1283_v38 = vadd.f32 %v418_v40, %v1251_v25  ;;  %v674_v20 = vld [vmem:[#allocation6 + $0xe0] sm:$0xf] }
  0x89   :  { %v873_v3 = vpop.eup %872  ;;  %886 = vtanh.bf16 %v535_v30  ;;  %v577_v44 = vadd.bf16 %v575_v52, %v572_v41  ;;  %v439_v43 = vunpack.c.l.bf16 %v437_v49  ;;  %v1286_v9 = vadd.f32 %v438_v50, %v1254_v59  ;;  %v653_v30 = vld [vmem:[#allocation6 + $0xd8] sm:$0xf]  ;;  %v518_v46 = vld [vmem:[#allocation9 + $0xa0] sm:$0xf] }
  0x8a   :  { %v875_v8 = vpop.eup %874  ;;  %888 = vtanh.bf16 %v555_v51  ;;  %v597_v63 = vadd.bf16 %v595_v57, %v592_v14  ;;  %v458_v45 = vmul.bf16 %v871_v58, %v456_v60  ;;  %v598_v25 = vadd.bf16 %v596_v47, %v593_v56  ;;  %v658_v50 = vld [vmem:[#allocation8 + $0xd8] sm:$0xf]  ;;  %v659_v51 = vld [vmem:[#allocation8 + $0xdc] sm:$0xf]  ;;  %v679_v56 = vld [vmem:[#allocation8 + $0xe0] sm:$0xf] }
  0x8b   :  { %v877_v15 = vpop.eup %876  ;;  %890 = vtanh.bf16 %v556_v55  ;;  %v613_v16 = vmul.bf16 %v1152_v4, %v611_v2  ;;  %v459_v19 = vunpack.c.l.bf16 %v457_v42  ;;  %v478_v21 = vmul.bf16 %v873_v3, %v476_v6  ;;  %v519_v2 = vld [vmem:[#allocation9 + $0xa4] sm:$0xf] }
  0x8c   :  { %892 = vtanh.bf16 %v576_v62  ;;  %v614_v59 = vmul.bf16 %v1154_v5, %v612_v7  ;;  %v879_v53 = vpop.eup %878  ;;  %v479_v23 = vmul.bf16 %v875_v8, %v477_v10  ;;  %v634_v29 = vmul.bf16 %v1152_v4, %v632_v12  ;;  %v695_v62 = vld [vmem:[#allocation6 + $0xe8] sm:$0xf]  ;;  %v680_v7 = vld [vmem:[#allocation8 + $0xe4] sm:$0xf]  ;;  %v696_v12 = vld [vmem:[#allocation6 + $0xec] sm:$0xf] }
  0x8d   :  { %894 = vtanh.bf16 %v577_v44  ;;  %v618_v28 = vadd.bf16 %v616_v11, %v613_v16  ;;  %v499_v32 = vmul.bf16 %v877_v15, %v497_v48  ;;  %v635_v35 = vmul.bf16 %v1154_v5, %v633_v18  ;;  %v1310_v10 = vld [vmem:[#allocation9 + $0xa8] sm:$0xf] }
  0x8e   :  { %896 = vtanh.bf16 %v597_v63  ;;  %v619_v33 = vadd.bf16 %v617_v17, %v614_v59  ;;  %v1293_v37 = vadd.f32 %v439_v43, %v1260_v0  ;;  %v460_v39 = vunpack.c.l.bf16 %v458_v45  ;;  %v675_v0 = vld [vmem:[#allocation6 + $0xe4] sm:$0xf]  ;;  %v700_v16 = vld [vmem:[#allocation8 + $0xe8] sm:$0xf]  ;;  %v716_v17 = vld [vmem:[#allocation6 + $0xf0] sm:$0xf] }
  0x8f   :  { %898 = vtanh.bf16 %v598_v25  ;;  %v639_v61 = vadd.bf16 %v637_v22, %v634_v29  ;;  %v480_v27 = vunpack.c.l.bf16 %v478_v21  ;;  %v500_v41 = vmul.bf16 %v879_v53, %v498_v54  ;;  %v1321_v25 = vld [vmem:[#allocation9 + $0xac] sm:$0xf]  ;;  %v717_v22 = vld [vmem:[#allocation6 + $0xf4] sm:$0xf] }
  0x90   :  { %v881_v40 = vpop.eup %880  ;;  %900 = vtanh.bf16 %v618_v28  ;;  %v640_v49 = vadd.bf16 %v638_v13, %v635_v35  ;;  %v481_v52 = vunpack.c.l.bf16 %v479_v23  ;;  %v655_v14 = vmul.bf16 %v1152_v4, %v653_v30  ;;  %v701_v59 = vld [vmem:[#allocation8 + $0xec] sm:$0xf]  ;;  %v560_v28 = vld [vmem:[#allocation9 + $0xb0] sm:$0xf] }
  0x91   :  { %902 = vtanh.bf16 %v619_v33  ;;  %v656_v55 = vmul.bf16 %v1154_v5, %v654_v36  ;;  %v1297_v57 = vpop.eup %882  ;;  %v1300_v58 = vadd.f32 %v459_v19, %v1264_v24  ;;  %v501_v60 = vunpack.c.l.bf16 %v499_v32  ;;  %v721_v13 = vld [vmem:[#allocation8 + $0xf0] sm:$0xf]  ;;  %v722_v36 = vld [vmem:[#allocation8 + $0xf4] sm:$0xf] }
  0x92   :  { %904 = vtanh.bf16 %v639_v61  ;;  %v676_v42 = vmul.bf16 %v1152_v4, %v674_v20  ;;  %v520_v3 = vmul.bf16 %v881_v40, %v518_v46  ;;  %v660_v6 = vadd.bf16 %v658_v50, %v655_v14  ;;  %v561_v40 = vld [vmem:[#allocation9 + $0xb4] sm:$0xf]  ;;  %v743_v50 = vld [vmem:[#allocation8 + $0xfc] sm:$0xf]  ;;  %v603_v14 = vld [vmem:[#allocation9 + $0xc4] sm:$0xf] }
  0x93   :  { %v1303_v47 = vpop.eup %884  ;;  %906 = vtanh.bf16 %v640_v49  ;;  %v661_v44 = vadd.bf16 %v659_v51, %v656_v55  ;;  %v1308_v43 = vadd.f32 %v460_v39, %v1267_v34  ;;  %v502_v24 = vunpack.c.l.bf16 %v500_v41  ;;  %v742_v39 = vld [vmem:[#allocation8 + $0xf8] sm:$0xf] }
  0x94   :  { %v1305_v8 = vpop.eup %886  ;;  %v677_v63 = vmul.bf16 %v1154_v5, %v675_v0  ;;  %v681_v11 = vadd.bf16 %v679_v56, %v676_v42  ;;  %v1316_v45 = vadd.f32 %v480_v27, %v1273_v26  ;;  %v1319_v48 = vadd.f32 %v481_v52, %v1277_v31  ;;  %v737_v31 = vld [vmem:[#allocation6 + $0xf8] sm:$0xf]  ;;  %v602_v27 = vld [vmem:[#allocation9 + $0xc0] sm:$0xf] }
  0x95   :  { %v1313_v15 = vpop.eup %888  ;;  %908 = vtanh.bf16 %v660_v6  ;;  %v697_v34 = vmul.bf16 %v1152_v4, %v695_v62  ;;  %v1327_v19 = vadd.f32 %v501_v60, %v1280_v1  ;;  %v521_v21 = vmul.bf16 %v1297_v57, %v519_v2  ;;  %v738_v1 = vld [vmem:[#allocation6 + $0xfc] sm:$0xf]  ;;  %v581_v52 = vld [vmem:[#allocation9 + $0xb8] sm:$0xf]  ;;  %v623_v60 = vld [vmem:[#allocation9 + $0xc8] sm:$0xf] }
  0x96   :  { %v1324_v18 = vpop.eup %890  ;;  %910 = vtanh.bf16 %v661_v44  ;;  %v682_v26 = vadd.bf16 %v680_v7, %v677_v63  ;;  %v522_v23 = vunpack.c.l.bf16 %v520_v3  ;;  %v541_v54 = vmul.bf16 %v1303_v47, %v1310_v10  ;;  %v624_v6 = vld [vmem:[#allocation9 + $0xcc] sm:$0xf] }
  0x97   :  { %v1330_v53 = vpop.eup %892  ;;  %912 = vtanh.bf16 %v681_v11  ;;  %v698_v29 = vmul.bf16 %v1154_v5, %v696_v12  ;;  %v1338_v33 = vadd.f32 %v502_v24, %v1283_v38  ;;  %v702_v35 = vadd.bf16 %v700_v16, %v697_v34 }
  0x98   :  { %v1335_v32 = vpop.eup %894  ;;  %914 = vtanh.bf16 %v682_v26  ;;  %v718_v30 = vmul.bf16 %v1152_v4, %v716_v17  ;;  %v542_v20 = vmul.bf16 %v1305_v8, %v1321_v25  ;;  %v719_v46 = vmul.bf16 %v1154_v5, %v717_v22  ;;  %v645_v25 = vld [vmem:[#allocation9 + $0xd4] sm:$0xf] }
  0x99   :  { %v897_v61 = vpop.eup %896  ;;  %v703_v41 = vadd.bf16 %v701_v59, %v698_v29  ;;  %v739_v49 = vmul.bf16 %v1152_v4, %v737_v31  ;;  %v562_v51 = vmul.bf16 %v1313_v15, %v560_v28  ;;  %916 = vtanh.bf16 %v702_v35  ;;  %v582_v4 = vld [vmem:[#allocation9 + $0xbc] sm:$0xf] }
  0x9a   :  { %v899_v38 = vpop.eup %898  ;;  %v723_v55 = vadd.bf16 %v721_v13, %v718_v30  ;;  %v740_v0 = vmul.bf16 %v1154_v5, %v738_v1  ;;  %v523_v57 = vunpack.c.l.bf16 %v521_v21  ;;  %v724_v42 = vadd.bf16 %v722_v36, %v719_v46  ;;  %v644_v5 = vld [vmem:[#allocation9 + $0xd0] sm:$0xf] }
  0x9b   :  { %v901_v56 = vpop.eup %900  ;;  %918 = vtanh.bf16 %v703_v41  ;;  %v744_v62 = vadd.bf16 %v742_v39, %v739_v49  ;;  %v563_v2 = vmul.bf16 %v1324_v18, %v561_v40  ;;  %v604_v3 = vmul.bf16 %v897_v61, %v602_v27  ;;  %v665_v18 = vld [vmem:[#allocation9 + $0xd8] sm:$0xf]  ;;  %v707_v41 = vld [vmem:[#allocation9 + $0xe8] sm:$0xf] }
  0x9c   :  { %v903_v47 = vpop.eup %902  ;;  %920 = vtanh.bf16 %v723_v55  ;;  %v745_v44 = vadd.bf16 %v743_v50, %v740_v0  ;;  %v543_v8 = vunpack.c.l.bf16 %v541_v54  ;;  %v583_v24 = vmul.bf16 %v1330_v53, %v581_v52  ;;  %v666_v53 = vld [vmem:[#allocation9 + $0xdc] sm:$0xf]  ;;  %v686_v54 = vld [vmem:[#allocation9 + $0xe0] sm:$0xf]  ;;  %v728_v55 = vld [vmem:[#allocation9 + $0xf0] sm:$0xf] }
  0x9d   :  { %v905_v7 = vpop.eup %904  ;;  %v605_v10 = vmul.bf16 %v899_v38, %v603_v14  ;;  %922 = vtanh.bf16 %v724_v42  ;;  %v544_v11 = vunpack.c.l.bf16 %v542_v20  ;;  %v564_v12 = vunpack.c.l.bf16 %v562_v51  ;;  %v708_v38 = vld [vmem:[#allocation9 + $0xec] sm:$0xf] }
  0x9e   :  { %v907_v63 = vpop.eup %906  ;;  %v625_v15 = vmul.bf16 %v901_v56, %v623_v60  ;;  %924 = vtanh.bf16 %v744_v62  ;;  %v524_v34 = vadd.f32 %v522_v23, %v1286_v9  ;;  %v584_v16 = vmul.bf16 %v1335_v32, %v582_v4  ;;  %v687_v9 = vld [vmem:[#allocation9 + $0xe4] sm:$0xf]  ;;  %v729_v62 = vld [vmem:[#allocation9 + $0xf4] sm:$0xf] }
  0x9f   :  { %v626_v17 = vmul.bf16 %v903_v47, %v624_v6  ;;  %926 = vtanh.bf16 %v745_v44  ;;  %v525_v26 = vadd.f32 %v523_v57, %v1293_v37  ;;  %v565_v59 = vunpack.c.l.bf16 %v563_v2  ;;  %v749_v6 = vld [vmem:[#allocation9 + $0xf8] sm:$0xf] }
  0xa0   :  { %v909_v21 = vpop.eup %908  ;;  %v606_v22 = vunpack.c.l.bf16 %v604_v3  ;;  %v646_v31 = vmul.bf16 %v905_v7, %v644_v5  ;;  %v545_v29 = vadd.f32 %v543_v8, %v1300_v58  ;;  %v585_v13 = vunpack.c.l.bf16 %v583_v24 }
  0xa1   :  { %v911_v28 = vpop.eup %910  ;;  %v607_v1 = vunpack.c.l.bf16 %v605_v10  ;;  %v647_v35 = vmul.bf16 %v907_v63, %v645_v25  ;;  %v546_v32 = vadd.f32 %v544_v11, %v1308_v43  ;;  %v566_v30 = vadd.f32 %v564_v12, %v1316_v45  ;;  %v750_v10 = vld [vmem:[#allocation9 + $0xfc] sm:$0xf] }
  0xa2   :  { %v913_v23 = vpop.eup %912  ;;  %v627_v36 = vunpack.c.l.bf16 %v625_v15  ;;  %v667_v39 = vmul.bf16 %v909_v21, %v665_v18  ;;  %v586_v61 = vunpack.c.l.bf16 %v584_v16  ;;  %v628_v20 = vunpack.c.l.bf16 %v626_v17 }
  0xa3   :  { %v915_v37 = vpop.eup %914  ;;  %v668_v40 = vmul.bf16 %v911_v28, %v666_v53  ;;  %v688_v27 = vmul.bf16 %v913_v23, %v686_v54  ;;  %v567_v46 = vadd.f32 %v565_v59, %v1319_v48  ;;  %v608_v58 = vadd.f32 %v606_v22, %v524_v34 }
  0xa4   :  { %v648_v49 = vunpack.c.l.bf16 %v646_v31  ;;  %v689_v50 = vmul.bf16 %v915_v37, %v687_v9  ;;  %v917_v51 = vpop.eup %916  ;;  %v587_v52 = vadd.f32 %v585_v13, %v1327_v19  ;;  %v609_v43 = vadd.f32 %v607_v1, %v525_v26 }
  0xa5   :  { %v649_v14 = vunpack.c.l.bf16 %v647_v35  ;;  %v690_v45 = vunpack.c.l.bf16 %v688_v27  ;;  %v629_v56 = vadd.f32 %v627_v36, %v545_v29  ;;  %v669_v57 = vunpack.c.l.bf16 %v667_v39 }
  0xa6   :  { %v919_v0 = vpop.eup %918  ;;  %v691_v60 = vunpack.c.l.bf16 %v689_v50  ;;  %v709_v42 = vmul.bf16 %v917_v51, %v707_v41  ;;  %v588_v48 = vadd.f32 %v586_v61, %v1338_v33  ;;  %v630_v2 = vadd.f32 %v628_v20, %v546_v32 }
  0xa7   :  { %v921_v47 = vpop.eup %920  ;;  %v670_v4 = vunpack.c.l.bf16 %v668_v40  ;;  %v710_v3 = vmul.bf16 %v919_v0, %v708_v38  ;;  %v650_v7 = vadd.f32 %v648_v49, %v566_v30  ;;  %v692_v19 = vadd.f32 %v690_v45, %v608_v58 }
  0xa8   :  { %v923_v44 = vpop.eup %922  ;;  %v711_v8 = vunpack.c.l.bf16 %v709_v42  ;;  %v730_v24 = vmul.bf16 %v921_v47, %v728_v55  ;;  %v651_v63 = vadd.f32 %v649_v14, %v567_v46  ;;  %v693_v11 = vadd.f32 %v691_v60, %v609_v43 }
  0xa9   :  { %v925_v5 = vpop.eup %924  ;;  %v712_v12 = vunpack.c.l.bf16 %v710_v3  ;;  %v731_v15 = vmul.bf16 %v923_v44, %v729_v62  ;;  %v671_v34 = vadd.f32 %v669_v57, %v587_v52  ;;  %v672_v18 = vadd.f32 %v670_v4, %v588_v48 }
  0xaa   :  { %v927_v25 = vpop.eup %926  ;;  %v713_v16 = vadd.f32 %v711_v8, %v629_v56  ;;  %v732_v17 = vunpack.c.l.bf16 %v730_v24  ;;  %v751_v33 = vmul.bf16 %v925_v5, %v749_v6  ;;  %v763_v23 = vstv %s1380_s4 }
  0xab   :  { %v714_v21 = vadd.f32 %v712_v12, %v630_v2  ;;  %v733_v26 = vunpack.c.l.bf16 %v731_v15  ;;  %v752_v59 = vmul.bf16 %v927_v25, %v750_v10 }
  0xac   :  { %v734_v22 = vadd.f32 %v732_v17, %v650_v7  ;;  %v753_v31 = vunpack.c.l.bf16 %v751_v33  ;;  %v757_v53 = vadd.f32 %v713_v16, %v692_v19 }
  0xad   :  { %v735_v54 = vadd.f32 %v733_v26, %v651_v63  ;;  %v754_v28 = vunpack.c.l.bf16 %v752_v59  ;;  %v758_v29 = vadd.f32 %v714_v21, %v693_v11 }
  0xae   :  { %v755_v13 = vadd.f32 %v753_v31, %v671_v34  ;;  %v759_v1 = vadd.f32 %v757_v53, %v734_v22 }
  0xaf   :  { %v756_v35 = vadd.f32 %v754_v28, %v672_v18  ;;  %v760_v9 = vadd.f32 %v758_v29, %v735_v54 }
  0xb0   :  { %v761_v32 = vadd.f32 %v759_v1, %v755_v13 }
  0xb1   :  { %v762_v30 = vadd.f32 %v760_v9, %v756_v35 }
  0xb2   :  { %v764_v36 = vadd.f32 %v763_v23, %v761_v32 }
  0xb3   :  { %v765_v39 = vadd.f32 %v763_v23, %v762_v30 }
  0xb4   :  { %766 = vst [vmem:[#allocation11] sm:$0xff] %v764_v36 }
  0xb5   :  { %767 = vst [vmem:[#allocation11 + $0x8] sm:$0xff] %v765_v39 }
  0xb6   :  { %1027 = shalt.err (!%p1024_p8)
}
  0xb7   :  { %s1028_s4 = scalar_lea.hbm %s1381_s5, 256 }
  0xb8   :  { %p1029_p9 = scmp.ne.s32.totalorder %s1381_s5, %s1028_s4  ;;  %p1032_p10 = scmp.lt.u32.totalorder %s1028_s4, %s1381_s5 }
  0xba   :  { %p1034_p11 = pnand %p1032_p10, %p1029_p9 }
  0xbc   :  { %1037 = shalt.err (!%p1034_p11)
}
  0xbd   :  { %779 = dma.vmem_to_hbm [thread:$0]  %s774_s20, 256, %s1381_s5, [#allocation5], %s1050_s1, %s1050_s1, %s1051_s17  }
  0xbe   :  { %1044 = dma.done.wait [#allocation5], 256  }
  0xbf   :  { %1045 = vsyncadd [#allocation5], 4294967040 }
  0xc0   :  { %783 = vsyncpa [#allocation4], 1 }
  0xc1   :  { %784 = vsyncpa [#allocation7], 1 }
  0xc2   :  { %785 = vsyncpa [#allocation10], 1 }
  0xc3   :  { %786 = vsyncpa [#allocation5], 1 }

</bundles_post_ra>
